<compile_context>
chip_gen: v7x
topology: tpu7x:2x2x1
jax: 0.10.0
libtpu: 0.0.40
codegen_flags: <defaults>
</compile_context>

<pallas_src>
import numpy as np
import jax
import jax.numpy as jnp
from jax import lax
from jax.experimental import pallas as pl
from jax.experimental.pallas import tpu as pltpu

_LANE = 128  # per-parity column block width (padded for lane alignment)


# ----------------------------------------------------------------------------
# Fused forward kernel (one grid step == one image)
# ----------------------------------------------------------------------------
def _net_kernel(x_ref, wt1_ref, b1_ref, wt2_ref, b2_ref,
                w1p_ref, bf1_ref, wf2_ref, bf2_ref, wf3_ref, bf3_ref,
                o_ref, p1_scr, feat_scr):
    f32 = jnp.float32

    # ---- conv1 (Toeplitz GEMM): (28, 256) = sum_di x[di:di+28, :] @ Wt1[di]
    acc1 = jnp.zeros((28, 2 * _LANE), f32)
    for di in range(5):
        xs = x_ref[0, pl.ds(di, 28), :]                       # (28, 96) bf16
        acc1 = acc1 + jnp.dot(xs, wt1_ref[di], preferred_element_type=f32)

    # ---- 2x2 max-pool: H via exact 0/1 selection matmuls, W via parity blocks
    r = lax.broadcasted_iota(jnp.int32, (14, 28), 0)
    c = lax.broadcasted_iota(jnp.int32, (14, 28), 1)
    sel_even = (c == 2 * r).astype(f32)
    sel_odd = (c == 2 * r + 1).astype(f32)
    hp = jnp.maximum(jnp.dot(sel_even, acc1, preferred_element_type=f32),
                     jnp.dot(sel_odd, acc1, preferred_element_type=f32))  # (14,256)
    wp = jnp.maximum(hp[:, :_LANE], hp[:, _LANE:])                         # (14,128)
    p1_scr[...] = jnp.maximum(wp + b1_ref[...], 0.0)          # bias+ReLU post-pool

    # ---- conv2 (Toeplitz GEMM): (10, 256) = sum_di p1[di:di+10, :] @ Wt2[di]
    acc2 = jnp.zeros((10, 2 * _LANE), f32)
    for di in range(5):
        ps = p1_scr[pl.ds(di, 10), :].astype(jnp.bfloat16)    # (10, 128)
        acc2 = acc2 + jnp.dot(ps, wt2_ref[di], preferred_element_type=f32)

    r2 = lax.broadcasted_iota(jnp.int32, (5, 10), 0)
    c2 = lax.broadcasted_iota(jnp.int32, (5, 10), 1)
    sel_even2 = (c2 == 2 * r2).astype(f32)
    sel_odd2 = (c2 == 2 * r2 + 1).astype(f32)
    hp2 = jnp.maximum(jnp.dot(sel_even2, acc2, preferred_element_type=f32),
                      jnp.dot(sel_odd2, acc2, preferred_element_type=f32))  # (5,256)
    wp2 = jnp.maximum(hp2[:, :_LANE], hp2[:, _LANE:])                        # (5,128)
    feat_scr[...] = jnp.maximum(wp2 + b2_ref[...], 0.0)        # (5,128): (h, c*5+w)

    # ---- fc1: contract the 5 spatial rows against the row-permuted weights
    acc3 = jnp.zeros((1, 8), f32)
    for h in range(5):
        acc3 = acc3 + jnp.dot(feat_scr[pl.ds(h, 1), :], w1p_ref[h],
                              preferred_element_type=f32)
    h1 = jnp.maximum(acc3 + bf1_ref[...], 0.0)                               # (1,8)
    h2 = jnp.maximum(jnp.dot(h1, wf2_ref[...], preferred_element_type=f32)
                     + bf2_ref[...], 0.0)                                    # (1,16)
    logits = jnp.dot(h2, wf3_ref[...], preferred_element_type=f32) + bf3_ref[...]
    o_ref[0] = logits                                                        # (1,10)


# ----------------------------------------------------------------------------
# Host-side weight repacking (one time, exact)
# ----------------------------------------------------------------------------
def _toeplitz(w, w_in, w_out, in_cols, out_cols):
    """Banded GEMM weights for a 5x5 valid conv along W.

    Input column layout : col = ci * w_in + j            (channel-major)
    Output column layout: col = parity*out_cols + co*(w_out//2) + w_half,
                          spatial j0 = 2*w_half + parity (parity-split for the
                          2x2 W-pool), padded to `out_cols` lanes per block.
    Returns (5, in_cols, 2*out_cols) float32."""
    cout, cin, kh, kw = w.shape
    woh = w_out // 2
    wt = np.zeros((kh, in_cols, 2 * out_cols), np.float32)
    for di in range(kh):
        for co in range(cout):
            for ci in range(cin):
                for dj in range(kw):
                    for p in range(2):
                        for wh in range(woh):
                            j = 2 * wh + p + dj
                            wt[di, ci * w_in + j,
                               p * out_cols + co * woh + wh] = w[co, ci, di, dj]
    return wt


def init_raw_params(key, l1=8, l2=16):
    """PyTorch-style uniform(-1/sqrt(fan_in)) parameters, PyTorch layouts."""
    ks = jax.random.split(key, 10)

    def u(k, shape, fan_in):
        bound = 1.0 / float(fan_in) ** 0.5
        return jax.random.uniform(k, shape, jnp.float32, -bound, bound)

    return {
        "w_conv1": u(ks[0], (6, 3, 5, 5), 3 * 25), "b_conv1": u(ks[1], (6,), 3 * 25),
        "w_conv2": u(ks[2], (16, 6, 5, 5), 6 * 25), "b_conv2": u(ks[3], (16,), 6 * 25),
        "w_fc1": u(ks[4], (l1, 400), 400), "b_fc1": u(ks[5], (l1,), 400),
        "w_fc2": u(ks[6], (l2, l1), l1), "b_fc2": u(ks[7], (l2,), l1),
        "w_fc3": u(ks[8], (10, l2), l2), "b_fc3": u(ks[9], (10,), l2),
    }


def pack_params(raw):
    w1 = np.asarray(raw["w_conv1"], np.float32)
    w2 = np.asarray(raw["w_conv2"], np.float32)
    wt1 = _toeplitz(w1, w_in=32, w_out=28, in_cols=96, out_cols=_LANE)      # (5,96,256)
    wt2 = _toeplitz(w2, w_in=14, w_out=10, in_cols=_LANE, out_cols=_LANE)   # (5,128,256)

    b1_np = np.asarray(raw["b_conv1"], np.float32)
    b2_np = np.asarray(raw["b_conv2"], np.float32)
    b1v = np.zeros((1, _LANE), np.float32)
    for co in range(6):
        b1v[0, co * 14:(co + 1) * 14] = b1_np[co]
    b2v = np.zeros((1, _LANE), np.float32)
    for co in range(16):
        b2v[0, co * 5:(co + 1) * 5] = b2_np[co]

    # fc1: PyTorch flatten order is c*25 + h*5 + w; kernel features are rows=h,
    # cols = c*5 + w (padded to 128).  Permute once so fc1 consumes them as-is.
    wf1 = np.asarray(raw["w_fc1"], np.float32)                 # (8, 400)
    w1p_core = np.transpose(wf1.reshape(8, 16, 5, 5), (2, 1, 3, 0)).reshape(5, 80, 8)
    w1p = np.zeros((5, _LANE, 8), np.float32)
    w1p[:, :80, :] = w1p_core

    return {
        "wt1": jnp.asarray(wt1, jnp.bfloat16),
        "b1": jnp.asarray(b1v),
        "wt2": jnp.asarray(wt2, jnp.bfloat16),
        "b2": jnp.asarray(b2v),
        "wfc1": jnp.asarray(w1p),
        "bfc1": jnp.asarray(np.asarray(raw["b_fc1"], np.float32).reshape(1, 8)),
        "wfc2": jnp.asarray(np.asarray(raw["w_fc2"], np.float32).T),   # (8,16)
        "bfc2": jnp.asarray(np.asarray(raw["b_fc2"], np.float32).reshape(1, 16)),
        "wfc3": jnp.asarray(np.asarray(raw["w_fc3"], np.float32).T),   # (16,10)
        "bfc3": jnp.asarray(np.asarray(raw["b_fc3"], np.float32).reshape(1, 10)),
    }


# ----------------------------------------------------------------------------
# Forward pass wrapper: one fused pallas_call
# ----------------------------------------------------------------------------
def net_forward(params, x_nchw):
    n = x_nchw.shape[0]
    assert x_nchw.shape[1:] == (3, 32, 32), x_nchw.shape
    # NCHW -> per-image 2D rows=h, cols = ci*32 + w (channel-major), bf16 operand
    x2d = jnp.transpose(x_nchw, (0, 2, 1, 3)).reshape(n, 32, 96).astype(jnp.bfloat16)

    out = pl.pallas_call(
        _net_kernel,
        out_shape=jax.ShapeDtypeStruct((n, 1, 10), jnp.float32),
        grid=(n,),
        in_specs=[
            pl.BlockSpec((1, 32, 96), lambda i: (i, 0, 0)),            # x (per image)
            pl.BlockSpec((5, 96, 2 * _LANE), lambda i: (0, 0, 0)),     # wt1
            pl.BlockSpec((1, _LANE), lambda i: (0, 0)),                # b1
            pl.BlockSpec((5, _LANE, 2 * _LANE), lambda i: (0, 0, 0)),  # wt2
            pl.BlockSpec((1, _LANE), lambda i: (0, 0)),                # b2
            pl.BlockSpec((5, _LANE, 8), lambda i: (0, 0, 0)),          # wfc1 (per-row)
            pl.BlockSpec((1, 8), lambda i: (0, 0)),                    # bfc1
            pl.BlockSpec((8, 16), lambda i: (0, 0)),                   # wfc2
            pl.BlockSpec((1, 16), lambda i: (0, 0)),                   # bfc2
            pl.BlockSpec((16, 10), lambda i: (0, 0)),                  # wfc3
            pl.BlockSpec((1, 10), lambda i: (0, 0)),                   # bfc3
        ],
        out_specs=pl.BlockSpec((1, 1, 10), lambda i: (i, 0, 0)),
        scratch_shapes=[
            pltpu.VMEM((14, _LANE), jnp.float32),   # pooled conv1 activations
            pltpu.VMEM((5, _LANE), jnp.float32),    # pooled conv2 activations
        ],
        compiler_params=pltpu.CompilerParams(
            dimension_semantics=("parallel",)),
    )(x2d, params["wt1"], params["b1"], params["wt2"], params["b2"],
      params["wfc1"], params["bfc1"], params["wfc2"], params["bfc2"],
      params["wfc3"], params["bfc3"])
    return out.reshape(n, 10)


# ----------------------------------------------------------------------------
# Pure-JAX reference (f32) for a sanity check against the PyTorch semantics
# ----------------------------------------------------------------------------
def reference_forward(raw, x):
    dn = ("NCHW", "OIHW", "NCHW")
    y = lax.conv_general_dilated(x, raw["w_conv1"], (1, 1), "VALID", dimension_numbers=dn)
    y = jnp.maximum(y + raw["b_conv1"][None, :, None, None], 0.0)
    y = lax.reduce_window(y, -jnp.inf, lax.max, (1, 1, 2, 2), (1, 1, 2, 2), "VALID")
    y = lax.conv_general_dilated(y, raw["w_conv2"], (1, 1), "VALID", dimension_numbers=dn)
    y = jnp.maximum(y + raw["b_conv2"][None, :, None, None], 0.0)
    y = lax.reduce_window(y, -jnp.inf, lax.max, (1, 1, 2, 2), (1, 1, 2, 2), "VALID")
    y = y.reshape(y.shape[0], -1)
    y = jnp.maximum(y @ raw["w_fc1"].T + raw["b_fc1"], 0.0)
    y = jnp.maximum(y @ raw["w_fc2"].T + raw["b_fc2"], 0.0)
    return y @ raw["w_fc3"].T + raw["b_fc3"]


if __name__ == "__main__":
    key = jax.random.PRNGKey(0)
    pkey, xkey = jax.random.split(key)
    raw = init_raw_params(pkey, l1=8, l2=16)
    params = pack_params(raw)

    # Module implies 32x32x3 input (16*5*5 flatten after two conv+pool stages).
    x = jax.random.normal(xkey, (2, 3, 32, 32), dtype=jnp.float32)

    out = jax.block_until_ready(jax.jit(net_forward)(params, x))
    assert out.shape == (2, 10), out.shape
    assert out.dtype == jnp.float32
    assert bool(jnp.all(jnp.isfinite(out)))

    # Numerical sanity vs. the plain-JAX reference (bf16 conv operands -> loose tol).
    ref = jax.block_until_ready(jax.jit(reference_forward)(raw, x))
    max_err = float(jnp.max(jnp.abs(out - ref)))
    assert max_err < 5e-2, f"mismatch vs reference: max abs err = {max_err}"

    print("KERNEL_OK")
</pallas_src>

<mosaic_0001>
module attributes {stable_mosaic.version = 11 : i64} {
  func.func @_net_kernel(%arg0: i32, %arg1: memref<1x32x96xbf16, #tpu.memory_space<vmem>>, %arg2: memref<5x96x256xbf16, #tpu.memory_space<vmem>>, %arg3: memref<1x128xf32, #tpu.memory_space<vmem>>, %arg4: memref<5x128x256xbf16, #tpu.memory_space<vmem>>, %arg5: memref<1x128xf32, #tpu.memory_space<vmem>>, %arg6: memref<5x128x8xf32, #tpu.memory_space<vmem>>, %arg7: memref<1x8xf32, #tpu.memory_space<vmem>>, %arg8: memref<8x16xf32, #tpu.memory_space<vmem>>, %arg9: memref<1x16xf32, #tpu.memory_space<vmem>>, %arg10: memref<16x10xf32, #tpu.memory_space<vmem>>, %arg11: memref<1x10xf32, #tpu.memory_space<vmem>>, %arg12: memref<1x1x10xf32, #tpu.memory_space<vmem>>, %arg13: memref<14x128xf32, #tpu.memory_space<vmem>>, %arg14: memref<5x128xf32, #tpu.memory_space<vmem>>) attributes {dimension_semantics = [#tpu.dimension_semantics<parallel>], iteration_bounds = array<i64: 2>, scalar_prefetch = 0 : i64, scratch_operands = 2 : i64, tpu.core_type = #tpu.core_type<tc>, window_params = [{transform_indices = @transform_0, window_bounds = array<i64: 1, 32, 96>}, {pipeline_mode = #tpu.pipeline_mode<synchronous>, transform_indices = @transform_1, window_bounds = array<i64: 5, 96, 256>}, {pipeline_mode = #tpu.pipeline_mode<synchronous>, transform_indices = @transform_2, window_bounds = array<i64: 1, 128>}, {pipeline_mode = #tpu.pipeline_mode<synchronous>, transform_indices = @transform_3, window_bounds = array<i64: 5, 128, 256>}, {pipeline_mode = #tpu.pipeline_mode<synchronous>, transform_indices = @transform_4, window_bounds = array<i64: 1, 128>}, {pipeline_mode = #tpu.pipeline_mode<synchronous>, transform_indices = @transform_5, window_bounds = array<i64: 5, 128, 8>}, {pipeline_mode = #tpu.pipeline_mode<synchronous>, transform_indices = @transform_6, window_bounds = array<i64: 1, 8>}, {pipeline_mode = #tpu.pipeline_mode<synchronous>, transform_indices = @transform_7, window_bounds = array<i64: 8, 16>}, {pipeline_mode = #tpu.pipeline_mode<synchronous>, transform_indices = @transform_8, window_bounds = array<i64: 1, 16>}, {pipeline_mode = #tpu.pipeline_mode<synchronous>, transform_indices = @transform_9, window_bounds = array<i64: 16, 10>}, {pipeline_mode = #tpu.pipeline_mode<synchronous>, transform_indices = @transform_10, window_bounds = array<i64: 1, 10>}, {transform_indices = @transform_11, window_bounds = array<i64: 1, 1, 10>}]} {
    %cst = arith.constant 0.000000e+00 : f32
    %0 = vector.broadcast %cst : f32 to vector<28x256xf32>
    %c0 = arith.constant 0 : index
    %c0_0 = arith.constant 0 : index
    %c0_1 = arith.constant 0 : index
    %1 = vector.load %arg1[%c0, %c0_0, %c0_1] : memref<1x32x96xbf16, #tpu.memory_space<vmem>>, vector<1x28x96xbf16>
    %2 = vector.shape_cast %1 : vector<1x28x96xbf16> to vector<28x96xbf16>
    %c0_2 = arith.constant 0 : index
    %c0_3 = arith.constant 0 : index
    %c0_4 = arith.constant 0 : index
    %3 = vector.load %arg2[%c0_2, %c0_3, %c0_4] : memref<5x96x256xbf16, #tpu.memory_space<vmem>>, vector<1x96x256xbf16>
    %4 = vector.shape_cast %3 : vector<1x96x256xbf16> to vector<96x256xbf16>
    %cst_5 = arith.constant dense<0.000000e+00> : vector<28x256xf32>
    %5 = tpu.matmul %2, %4, %cst_5 {dimension_numbers = #tpu.dot_dimension_numbers<[1], [0], [0], [1], [0, 0, 1, 1], [], []>} : vector<28x96xbf16>, vector<96x256xbf16>, vector<28x256xf32> -> vector<28x256xf32>
    %6 = arith.addf %0, %5 : vector<28x256xf32>
    %c0_6 = arith.constant 0 : index
    %c1 = arith.constant 1 : index
    %c0_7 = arith.constant 0 : index
    %7 = vector.load %arg1[%c0_6, %c1, %c0_7] : memref<1x32x96xbf16, #tpu.memory_space<vmem>>, vector<1x28x96xbf16>
    %8 = vector.shape_cast %7 : vector<1x28x96xbf16> to vector<28x96xbf16>
    %c1_8 = arith.constant 1 : index
    %c0_9 = arith.constant 0 : index
    %c0_10 = arith.constant 0 : index
    %9 = vector.load %arg2[%c1_8, %c0_9, %c0_10] : memref<5x96x256xbf16, #tpu.memory_space<vmem>>, vector<1x96x256xbf16>
    %10 = vector.shape_cast %9 : vector<1x96x256xbf16> to vector<96x256xbf16>
    %cst_11 = arith.constant dense<0.000000e+00> : vector<28x256xf32>
    %11 = tpu.matmul %8, %10, %cst_11 {dimension_numbers = #tpu.dot_dimension_numbers<[1], [0], [0], [1], [0, 0, 1, 1], [], []>} : vector<28x96xbf16>, vector<96x256xbf16>, vector<28x256xf32> -> vector<28x256xf32>
    %12 = arith.addf %6, %11 : vector<28x256xf32>
    %c0_12 = arith.constant 0 : index
    %c2 = arith.constant 2 : index
    %c0_13 = arith.constant 0 : index
    %13 = vector.load %arg1[%c0_12, %c2, %c0_13] : memref<1x32x96xbf16, #tpu.memory_space<vmem>>, vector<1x28x96xbf16>
    %14 = vector.shape_cast %13 : vector<1x28x96xbf16> to vector<28x96xbf16>
    %c2_14 = arith.constant 2 : index
    %c0_15 = arith.constant 0 : index
    %c0_16 = arith.constant 0 : index
    %15 = vector.load %arg2[%c2_14, %c0_15, %c0_16] : memref<5x96x256xbf16, #tpu.memory_space<vmem>>, vector<1x96x256xbf16>
    %16 = vector.shape_cast %15 : vector<1x96x256xbf16> to vector<96x256xbf16>
    %cst_17 = arith.constant dense<0.000000e+00> : vector<28x256xf32>
    %17 = tpu.matmul %14, %16, %cst_17 {dimension_numbers = #tpu.dot_dimension_numbers<[1], [0], [0], [1], [0, 0, 1, 1], [], []>} : vector<28x96xbf16>, vector<96x256xbf16>, vector<28x256xf32> -> vector<28x256xf32>
    %18 = arith.addf %12, %17 : vector<28x256xf32>
    %c0_18 = arith.constant 0 : index
    %c3 = arith.constant 3 : index
    %c0_19 = arith.constant 0 : index
    %19 = vector.load %arg1[%c0_18, %c3, %c0_19] : memref<1x32x96xbf16, #tpu.memory_space<vmem>>, vector<1x28x96xbf16>
    %20 = vector.shape_cast %19 : vector<1x28x96xbf16> to vector<28x96xbf16>
    %c3_20 = arith.constant 3 : index
    %c0_21 = arith.constant 0 : index
    %c0_22 = arith.constant 0 : index
    %21 = vector.load %arg2[%c3_20, %c0_21, %c0_22] : memref<5x96x256xbf16, #tpu.memory_space<vmem>>, vector<1x96x256xbf16>
    %22 = vector.shape_cast %21 : vector<1x96x256xbf16> to vector<96x256xbf16>
    %cst_23 = arith.constant dense<0.000000e+00> : vector<28x256xf32>
    %23 = tpu.matmul %20, %22, %cst_23 {dimension_numbers = #tpu.dot_dimension_numbers<[1], [0], [0], [1], [0, 0, 1, 1], [], []>} : vector<28x96xbf16>, vector<96x256xbf16>, vector<28x256xf32> -> vector<28x256xf32>
    %24 = arith.addf %18, %23 : vector<28x256xf32>
    %c0_24 = arith.constant 0 : index
    %c4 = arith.constant 4 : index
    %c0_25 = arith.constant 0 : index
    %25 = vector.load %arg1[%c0_24, %c4, %c0_25] : memref<1x32x96xbf16, #tpu.memory_space<vmem>>, vector<1x28x96xbf16>
    %26 = vector.shape_cast %25 : vector<1x28x96xbf16> to vector<28x96xbf16>
    %c4_26 = arith.constant 4 : index
    %c0_27 = arith.constant 0 : index
    %c0_28 = arith.constant 0 : index
    %27 = vector.load %arg2[%c4_26, %c0_27, %c0_28] : memref<5x96x256xbf16, #tpu.memory_space<vmem>>, vector<1x96x256xbf16>
    %28 = vector.shape_cast %27 : vector<1x96x256xbf16> to vector<96x256xbf16>
    %cst_29 = arith.constant dense<0.000000e+00> : vector<28x256xf32>
    %29 = tpu.matmul %26, %28, %cst_29 {dimension_numbers = #tpu.dot_dimension_numbers<[1], [0], [0], [1], [0, 0, 1, 1], [], []>} : vector<28x96xbf16>, vector<96x256xbf16>, vector<28x256xf32> -> vector<28x256xf32>
    %30 = arith.addf %24, %29 : vector<28x256xf32>
    %31 = tpu.iota {dimensions = array<i32: 0>} : vector<14x28xi32>
    %32 = tpu.iota {dimensions = array<i32: 1>} : vector<14x28xi32>
    %c2_i32 = arith.constant 2 : i32
    %33 = vector.broadcast %c2_i32 : i32 to vector<14x28xi32>
    %34 = arith.muli %33, %31 : vector<14x28xi32>
    %35 = arith.cmpi eq, %32, %34 : vector<14x28xi32>
    %36 = arith.extui %35 : vector<14x28xi1> to vector<14x28xi32>
    %37 = arith.sitofp %36 : vector<14x28xi32> to vector<14x28xf32>
    %c2_i32_30 = arith.constant 2 : i32
    %38 = vector.broadcast %c2_i32_30 : i32 to vector<14x28xi32>
    %39 = arith.muli %38, %31 : vector<14x28xi32>
    %c1_i32 = arith.constant 1 : i32
    %40 = vector.broadcast %c1_i32 : i32 to vector<14x28xi32>
    %41 = arith.addi %39, %40 : vector<14x28xi32>
    %42 = arith.cmpi eq, %32, %41 : vector<14x28xi32>
    %43 = arith.extui %42 : vector<14x28xi1> to vector<14x28xi32>
    %44 = arith.sitofp %43 : vector<14x28xi32> to vector<14x28xf32>
    %cst_31 = arith.constant dense<0.000000e+00> : vector<14x256xf32>
    %45 = tpu.matmul %37, %30, %cst_31 {dimension_numbers = #tpu.dot_dimension_numbers<[1], [0], [0], [1], [0, 0, 1, 1], [], []>} : vector<14x28xf32>, vector<28x256xf32>, vector<14x256xf32> -> vector<14x256xf32>
    %cst_32 = arith.constant dense<0.000000e+00> : vector<14x256xf32>
    %46 = tpu.matmul %44, %30, %cst_32 {dimension_numbers = #tpu.dot_dimension_numbers<[1], [0], [0], [1], [0, 0, 1, 1], [], []>} : vector<14x28xf32>, vector<28x256xf32>, vector<14x256xf32> -> vector<14x256xf32>
    %47 = arith.maximumf %45, %46 : vector<14x256xf32>
    %48 = vector.extract_strided_slice %47 {offsets = [0, 0], sizes = [14, 128], strides = [1, 1]} : vector<14x256xf32> to vector<14x128xf32>
    %49 = vector.extract_strided_slice %47 {offsets = [0, 128], sizes = [14, 128], strides = [1, 1]} : vector<14x256xf32> to vector<14x128xf32>
    %50 = arith.maximumf %48, %49 : vector<14x128xf32>
    %c0_33 = arith.constant 0 : index
    %c0_34 = arith.constant 0 : index
    %51 = vector.load %arg3[%c0_33, %c0_34] : memref<1x128xf32, #tpu.memory_space<vmem>>, vector<1x128xf32>
    %52 = vector.broadcast %51 : vector<1x128xf32> to vector<14x128xf32>
    %53 = arith.addf %50, %52 : vector<14x128xf32>
    %cst_35 = arith.constant 0.000000e+00 : f32
    %54 = vector.broadcast %cst_35 : f32 to vector<14x128xf32>
    %55 = arith.maximumf %53, %54 : vector<14x128xf32>
    %c0_36 = arith.constant 0 : index
    %c0_37 = arith.constant 0 : index
    %56 = vector.load %arg13[%c0_36, %c0_37] : memref<14x128xf32, #tpu.memory_space<vmem>>, vector<14x128xf32>
    tpu.vector_store %arg13[%c0_36, %c0_37], %55 {strides = array<i32>} : memref<14x128xf32, #tpu.memory_space<vmem>>, vector<14x128xf32>,
    %cst_38 = arith.constant 0.000000e+00 : f32
    %57 = vector.broadcast %cst_38 : f32 to vector<10x256xf32>
    %c0_39 = arith.constant 0 : index
    %c0_40 = arith.constant 0 : index
    %58 = vector.load %arg13[%c0_39, %c0_40] : memref<14x128xf32, #tpu.memory_space<vmem>>, vector<10x128xf32>
    %59 = arith.truncf %58 : vector<10x128xf32> to vector<10x128xbf16>
    %c0_41 = arith.constant 0 : index
    %c0_42 = arith.constant 0 : index
    %c0_43 = arith.constant 0 : index
    %60 = vector.load %arg4[%c0_41, %c0_42, %c0_43] : memref<5x128x256xbf16, #tpu.memory_space<vmem>>, vector<1x128x256xbf16>
    %61 = vector.shape_cast %60 : vector<1x128x256xbf16> to vector<128x256xbf16>
    %cst_44 = arith.constant dense<0.000000e+00> : vector<10x256xf32>
    %62 = tpu.matmul %59, %61, %cst_44 {dimension_numbers = #tpu.dot_dimension_numbers<[1], [0], [0], [1], [0, 0, 1, 1], [], []>} : vector<10x128xbf16>, vector<128x256xbf16>, vector<10x256xf32> -> vector<10x256xf32>
    %63 = arith.addf %57, %62 : vector<10x256xf32>
    %c1_45 = arith.constant 1 : index
    %c0_46 = arith.constant 0 : index
    %64 = vector.load %arg13[%c1_45, %c0_46] : memref<14x128xf32, #tpu.memory_space<vmem>>, vector<10x128xf32>
    %65 = arith.truncf %64 : vector<10x128xf32> to vector<10x128xbf16>
    %c1_47 = arith.constant 1 : index
    %c0_48 = arith.constant 0 : index
    %c0_49 = arith.constant 0 : index
    %66 = vector.load %arg4[%c1_47, %c0_48, %c0_49] : memref<5x128x256xbf16, #tpu.memory_space<vmem>>, vector<1x128x256xbf16>
    %67 = vector.shape_cast %66 : vector<1x128x256xbf16> to vector<128x256xbf16>
    %cst_50 = arith.constant dense<0.000000e+00> : vector<10x256xf32>
    %68 = tpu.matmul %65, %67, %cst_50 {dimension_numbers = #tpu.dot_dimension_numbers<[1], [0], [0], [1], [0, 0, 1, 1], [], []>} : vector<10x128xbf16>, vector<128x256xbf16>, vector<10x256xf32> -> vector<10x256xf32>
    %69 = arith.addf %63, %68 : vector<10x256xf32>
    %c2_51 = arith.constant 2 : index
    %c0_52 = arith.constant 0 : index
    %70 = vector.load %arg13[%c2_51, %c0_52] : memref<14x128xf32, #tpu.memory_space<vmem>>, vector<10x128xf32>
    %71 = arith.truncf %70 : vector<10x128xf32> to vector<10x128xbf16>
    %c2_53 = arith.constant 2 : index
    %c0_54 = arith.constant 0 : index
    %c0_55 = arith.constant 0 : index
    %72 = vector.load %arg4[%c2_53, %c0_54, %c0_55] : memref<5x128x256xbf16, #tpu.memory_space<vmem>>, vector<1x128x256xbf16>
    %73 = vector.shape_cast %72 : vector<1x128x256xbf16> to vector<128x256xbf16>
    %cst_56 = arith.constant dense<0.000000e+00> : vector<10x256xf32>
    %74 = tpu.matmul %71, %73, %cst_56 {dimension_numbers = #tpu.dot_dimension_numbers<[1], [0], [0], [1], [0, 0, 1, 1], [], []>} : vector<10x128xbf16>, vector<128x256xbf16>, vector<10x256xf32> -> vector<10x256xf32>
    %75 = arith.addf %69, %74 : vector<10x256xf32>
    %c3_57 = arith.constant 3 : index
    %c0_58 = arith.constant 0 : index
    %76 = vector.load %arg13[%c3_57, %c0_58] : memref<14x128xf32, #tpu.memory_space<vmem>>, vector<10x128xf32>
    %77 = arith.truncf %76 : vector<10x128xf32> to vector<10x128xbf16>
    %c3_59 = arith.constant 3 : index
    %c0_60 = arith.constant 0 : index
    %c0_61 = arith.constant 0 : index
    %78 = vector.load %arg4[%c3_59, %c0_60, %c0_61] : memref<5x128x256xbf16, #tpu.memory_space<vmem>>, vector<1x128x256xbf16>
    %79 = vector.shape_cast %78 : vector<1x128x256xbf16> to vector<128x256xbf16>
    %cst_62 = arith.constant dense<0.000000e+00> : vector<10x256xf32>
    %80 = tpu.matmul %77, %79, %cst_62 {dimension_numbers = #tpu.dot_dimension_numbers<[1], [0], [0], [1], [0, 0, 1, 1], [], []>} : vector<10x128xbf16>, vector<128x256xbf16>, vector<10x256xf32> -> vector<10x256xf32>
    %81 = arith.addf %75, %80 : vector<10x256xf32>
    %c4_63 = arith.constant 4 : index
    %c0_64 = arith.constant 0 : index
    %82 = vector.load %arg13[%c4_63, %c0_64] : memref<14x128xf32, #tpu.memory_space<vmem>>, vector<10x128xf32>
    %83 = arith.truncf %82 : vector<10x128xf32> to vector<10x128xbf16>
    %c4_65 = arith.constant 4 : index
    %c0_66 = arith.constant 0 : index
    %c0_67 = arith.constant 0 : index
    %84 = vector.load %arg4[%c4_65, %c0_66, %c0_67] : memref<5x128x256xbf16, #tpu.memory_space<vmem>>, vector<1x128x256xbf16>
    %85 = vector.shape_cast %84 : vector<1x128x256xbf16> to vector<128x256xbf16>
    %cst_68 = arith.constant dense<0.000000e+00> : vector<10x256xf32>
    %86 = tpu.matmul %83, %85, %cst_68 {dimension_numbers = #tpu.dot_dimension_numbers<[1], [0], [0], [1], [0, 0, 1, 1], [], []>} : vector<10x128xbf16>, vector<128x256xbf16>, vector<10x256xf32> -> vector<10x256xf32>
    %87 = arith.addf %81, %86 : vector<10x256xf32>
    %88 = tpu.iota {dimensions = array<i32: 0>} : vector<5x10xi32>
    %89 = tpu.iota {dimensions = array<i32: 1>} : vector<5x10xi32>
    %c2_i32_69 = arith.constant 2 : i32
    %90 = vector.broadcast %c2_i32_69 : i32 to vector<5x10xi32>
    %91 = arith.muli %90, %88 : vector<5x10xi32>
    %92 = arith.cmpi eq, %89, %91 : vector<5x10xi32>
    %93 = arith.extui %92 : vector<5x10xi1> to vector<5x10xi32>
    %94 = arith.sitofp %93 : vector<5x10xi32> to vector<5x10xf32>
    %c2_i32_70 = arith.constant 2 : i32
    %95 = vector.broadcast %c2_i32_70 : i32 to vector<5x10xi32>
    %96 = arith.muli %95, %88 : vector<5x10xi32>
    %c1_i32_71 = arith.constant 1 : i32
    %97 = vector.broadcast %c1_i32_71 : i32 to vector<5x10xi32>
    %98 = arith.addi %96, %97 : vector<5x10xi32>
    %99 = arith.cmpi eq, %89, %98 : vector<5x10xi32>
    %100 = arith.extui %99 : vector<5x10xi1> to vector<5x10xi32>
    %101 = arith.sitofp %100 : vector<5x10xi32> to vector<5x10xf32>
    %cst_72 = arith.constant dense<0.000000e+00> : vector<5x256xf32>
    %102 = tpu.matmul %94, %87, %cst_72 {dimension_numbers = #tpu.dot_dimension_numbers<[1], [0], [0], [1], [0, 0, 1, 1], [], []>} : vector<5x10xf32>, vector<10x256xf32>, vector<5x256xf32> -> vector<5x256xf32>
    %cst_73 = arith.constant dense<0.000000e+00> : vector<5x256xf32>
    %103 = tpu.matmul %101, %87, %cst_73 {dimension_numbers = #tpu.dot_dimension_numbers<[1], [0], [0], [1], [0, 0, 1, 1], [], []>} : vector<5x10xf32>, vector<10x256xf32>, vector<5x256xf32> -> vector<5x256xf32>
    %104 = arith.maximumf %102, %103 : vector<5x256xf32>
    %105 = vector.extract_strided_slice %104 {offsets = [0, 0], sizes = [5, 128], strides = [1, 1]} : vector<5x256xf32> to vector<5x128xf32>
    %106 = vector.extract_strided_slice %104 {offsets = [0, 128], sizes = [5, 128], strides = [1, 1]} : vector<5x256xf32> to vector<5x128xf32>
    %107 = arith.maximumf %105, %106 : vector<5x128xf32>
    %c0_74 = arith.constant 0 : index
    %c0_75 = arith.constant 0 : index
    %108 = vector.load %arg5[%c0_74, %c0_75] : memref<1x128xf32, #tpu.memory_space<vmem>>, vector<1x128xf32>
    %109 = vector.broadcast %108 : vector<1x128xf32> to vector<5x128xf32>
    %110 = arith.addf %107, %109 : vector<5x128xf32>
    %cst_76 = arith.constant 0.000000e+00 : f32
    %111 = vector.broadcast %cst_76 : f32 to vector<5x128xf32>
    %112 = arith.maximumf %110, %111 : vector<5x128xf32>
    %c0_77 = arith.constant 0 : index
    %c0_78 = arith.constant 0 : index
    %113 = vector.load %arg14[%c0_77, %c0_78] : memref<5x128xf32, #tpu.memory_space<vmem>>, vector<5x128xf32>
    tpu.vector_store %arg14[%c0_77, %c0_78], %112 {strides = array<i32>} : memref<5x128xf32, #tpu.memory_space<vmem>>, vector<5x128xf32>,
    %cst_79 = arith.constant 0.000000e+00 : f32
    %114 = vector.broadcast %cst_79 : f32 to vector<1x8xf32>
    %c0_80 = arith.constant 0 : index
    %c0_81 = arith.constant 0 : index
    %115 = vector.load %arg14[%c0_80, %c0_81] : memref<5x128xf32, #tpu.memory_space<vmem>>, vector<1x128xf32>
    %c0_82 = arith.constant 0 : index
    %c0_83 = arith.constant 0 : index
    %c0_84 = arith.constant 0 : index
    %116 = vector.load %arg6[%c0_82, %c0_83, %c0_84] : memref<5x128x8xf32, #tpu.memory_space<vmem>>, vector<1x128x8xf32>
    %117 = vector.shape_cast %116 : vector<1x128x8xf32> to vector<128x8xf32>
    %cst_85 = arith.constant dense<0.000000e+00> : vector<1x8xf32>
    %118 = tpu.matmul %115, %117, %cst_85 {dimension_numbers = #tpu.dot_dimension_numbers<[1], [0], [0], [1], [0, 0, 1, 1], [], []>} : vector<1x128xf32>, vector<128x8xf32>, vector<1x8xf32> -> vector<1x8xf32>
    %119 = arith.addf %114, %118 : vector<1x8xf32>
    %c1_86 = arith.constant 1 : index
    %c0_87 = arith.constant 0 : index
    %120 = vector.load %arg14[%c1_86, %c0_87] : memref<5x128xf32, #tpu.memory_space<vmem>>, vector<1x128xf32>
    %c1_88 = arith.constant 1 : index
    %c0_89 = arith.constant 0 : index
    %c0_90 = arith.constant 0 : index
    %121 = vector.load %arg6[%c1_88, %c0_89, %c0_90] : memref<5x128x8xf32, #tpu.memory_space<vmem>>, vector<1x128x8xf32>
    %122 = vector.shape_cast %121 : vector<1x128x8xf32> to vector<128x8xf32>
    %cst_91 = arith.constant dense<0.000000e+00> : vector<1x8xf32>
    %123 = tpu.matmul %120, %122, %cst_91 {dimension_numbers = #tpu.dot_dimension_numbers<[1], [0], [0], [1], [0, 0, 1, 1], [], []>} : vector<1x128xf32>, vector<128x8xf32>, vector<1x8xf32> -> vector<1x8xf32>
    %124 = arith.addf %119, %123 : vector<1x8xf32>
    %c2_92 = arith.constant 2 : index
    %c0_93 = arith.constant 0 : index
    %125 = vector.load %arg14[%c2_92, %c0_93] : memref<5x128xf32, #tpu.memory_space<vmem>>, vector<1x128xf32>
    %c2_94 = arith.constant 2 : index
    %c0_95 = arith.constant 0 : index
    %c0_96 = arith.constant 0 : index
    %126 = vector.load %arg6[%c2_94, %c0_95, %c0_96] : memref<5x128x8xf32, #tpu.memory_space<vmem>>, vector<1x128x8xf32>
    %127 = vector.shape_cast %126 : vector<1x128x8xf32> to vector<128x8xf32>
    %cst_97 = arith.constant dense<0.000000e+00> : vector<1x8xf32>
    %128 = tpu.matmul %125, %127, %cst_97 {dimension_numbers = #tpu.dot_dimension_numbers<[1], [0], [0], [1], [0, 0, 1, 1], [], []>} : vector<1x128xf32>, vector<128x8xf32>, vector<1x8xf32> -> vector<1x8xf32>
    %129 = arith.addf %124, %128 : vector<1x8xf32>
    %c3_98 = arith.constant 3 : index
    %c0_99 = arith.constant 0 : index
    %130 = vector.load %arg14[%c3_98, %c0_99] : memref<5x128xf32, #tpu.memory_space<vmem>>, vector<1x128xf32>
    %c3_100 = arith.constant 3 : index
    %c0_101 = arith.constant 0 : index
    %c0_102 = arith.constant 0 : index
    %131 = vector.load %arg6[%c3_100, %c0_101, %c0_102] : memref<5x128x8xf32, #tpu.memory_space<vmem>>, vector<1x128x8xf32>
    %132 = vector.shape_cast %131 : vector<1x128x8xf32> to vector<128x8xf32>
    %cst_103 = arith.constant dense<0.000000e+00> : vector<1x8xf32>
    %133 = tpu.matmul %130, %132, %cst_103 {dimension_numbers = #tpu.dot_dimension_numbers<[1], [0], [0], [1], [0, 0, 1, 1], [], []>} : vector<1x128xf32>, vector<128x8xf32>, vector<1x8xf32> -> vector<1x8xf32>
    %134 = arith.addf %129, %133 : vector<1x8xf32>
    %c4_104 = arith.constant 4 : index
    %c0_105 = arith.constant 0 : index
    %135 = vector.load %arg14[%c4_104, %c0_105] : memref<5x128xf32, #tpu.memory_space<vmem>>, vector<1x128xf32>
    %c4_106 = arith.constant 4 : index
    %c0_107 = arith.constant 0 : index
    %c0_108 = arith.constant 0 : index
    %136 = vector.load %arg6[%c4_106, %c0_107, %c0_108] : memref<5x128x8xf32, #tpu.memory_space<vmem>>, vector<1x128x8xf32>
    %137 = vector.shape_cast %136 : vector<1x128x8xf32> to vector<128x8xf32>
    %cst_109 = arith.constant dense<0.000000e+00> : vector<1x8xf32>
    %138 = tpu.matmul %135, %137, %cst_109 {dimension_numbers = #tpu.dot_dimension_numbers<[1], [0], [0], [1], [0, 0, 1, 1], [], []>} : vector<1x128xf32>, vector<128x8xf32>, vector<1x8xf32> -> vector<1x8xf32>
    %139 = arith.addf %134, %138 : vector<1x8xf32>
    %c0_110 = arith.constant 0 : index
    %c0_111 = arith.constant 0 : index
    %140 = vector.load %arg7[%c0_110, %c0_111] : memref<1x8xf32, #tpu.memory_space<vmem>>, vector<1x8xf32>
    %141 = arith.addf %139, %140 : vector<1x8xf32>
    %cst_112 = arith.constant 0.000000e+00 : f32
    %142 = vector.broadcast %cst_112 : f32 to vector<1x8xf32>
    %143 = arith.maximumf %141, %142 : vector<1x8xf32>
    %c0_113 = arith.constant 0 : index
    %c0_114 = arith.constant 0 : index
    %144 = vector.load %arg8[%c0_113, %c0_114] : memref<8x16xf32, #tpu.memory_space<vmem>>, vector<8x16xf32>
    %cst_115 = arith.constant dense<0.000000e+00> : vector<1x16xf32>
    %145 = tpu.matmul %143, %144, %cst_115 {dimension_numbers = #tpu.dot_dimension_numbers<[1], [0], [0], [1], [0, 0, 1, 1], [], []>} : vector<1x8xf32>, vector<8x16xf32>, vector<1x16xf32> -> vector<1x16xf32>
    %c0_116 = arith.constant 0 : index
    %c0_117 = arith.constant 0 : index
    %146 = vector.load %arg9[%c0_116, %c0_117] : memref<1x16xf32, #tpu.memory_space<vmem>>, vector<1x16xf32>
    %147 = arith.addf %145, %146 : vector<1x16xf32>
    %cst_118 = arith.constant 0.000000e+00 : f32
    %148 = vector.broadcast %cst_118 : f32 to vector<1x16xf32>
    %149 = arith.maximumf %147, %148 : vector<1x16xf32>
    %c0_119 = arith.constant 0 : index
    %c0_120 = arith.constant 0 : index
    %150 = vector.load %arg10[%c0_119, %c0_120] : memref<16x10xf32, #tpu.memory_space<vmem>>, vector<16x10xf32>
    %cst_121 = arith.constant dense<0.000000e+00> : vector<1x10xf32>
    %151 = tpu.matmul %149, %150, %cst_121 {dimension_numbers = #tpu.dot_dimension_numbers<[1], [0], [0], [1], [0, 0, 1, 1], [], []>} : vector<1x16xf32>, vector<16x10xf32>, vector<1x10xf32> -> vector<1x10xf32>
    %c0_122 = arith.constant 0 : index
    %c0_123 = arith.constant 0 : index
    %152 = vector.load %arg11[%c0_122, %c0_123] : memref<1x10xf32, #tpu.memory_space<vmem>>, vector<1x10xf32>
    %153 = arith.addf %151, %152 : vector<1x10xf32>
    %c0_124 = arith.constant 0 : index
    %c0_125 = arith.constant 0 : index
    %c0_126 = arith.constant 0 : index
    %154 = vector.load %arg12[%c0_124, %c0_125, %c0_126] : memref<1x1x10xf32, #tpu.memory_space<vmem>>, vector<1x1x10xf32>
    %155 = vector.shape_cast %154 : vector<1x1x10xf32> to vector<1x10xf32>
    %156 = vector.shape_cast %153 : vector<1x10xf32> to vector<1x1x10xf32>
    tpu.vector_store %arg12[%c0_124, %c0_125, %c0_126], %156 {strides = array<i32>} : memref<1x1x10xf32, #tpu.memory_space<vmem>>, vector<1x1x10xf32>,
    return
  }
  func.func @transform_0(%arg0: i32) -> (i32, i32, i32) {
    %c0_i32 = arith.constant 0 : i32
    %c0_i32_0 = arith.constant 0 : i32
    %c0_i32_1 = arith.constant 0 : i32
    return %arg0, %c0_i32, %c0_i32_0 : i32, i32, i32
  }
  func.func @transform_1(%arg0: i32) -> (i32, i32, i32) {
    %c0_i32 = arith.constant 0 : i32
    %c0_i32_0 = arith.constant 0 : i32
    %c0_i32_1 = arith.constant 0 : i32
    %c0_i32_2 = arith.constant 0 : i32
    return %c0_i32, %c0_i32_0, %c0_i32_1 : i32, i32, i32
  }
  func.func @transform_2(%arg0: i32) -> (i32, i32) {
    %c0_i32 = arith.constant 0 : i32
    %c0_i32_0 = arith.constant 0 : i32
    %c0_i32_1 = arith.constant 0 : i32
    return %c0_i32, %c0_i32_0 : i32, i32
  }
  func.func @transform_3(%arg0: i32) -> (i32, i32, i32) {
    %c0_i32 = arith.constant 0 : i32
    %c0_i32_0 = arith.constant 0 : i32
    %c0_i32_1 = arith.constant 0 : i32
    %c0_i32_2 = arith.constant 0 : i32
    return %c0_i32, %c0_i32_0, %c0_i32_1 : i32, i32, i32
  }
  func.func @transform_4(%arg0: i32) -> (i32, i32) {
    %c0_i32 = arith.constant 0 : i32
    %c0_i32_0 = arith.constant 0 : i32
    %c0_i32_1 = arith.constant 0 : i32
    return %c0_i32, %c0_i32_0 : i32, i32
  }
  func.func @transform_5(%arg0: i32) -> (i32, i32, i32) {
    %c0_i32 = arith.constant 0 : i32
    %c0_i32_0 = arith.constant 0 : i32
    %c0_i32_1 = arith.constant 0 : i32
    %c0_i32_2 = arith.constant 0 : i32
    return %c0_i32, %c0_i32_0, %c0_i32_1 : i32, i32, i32
  }
  func.func @transform_6(%arg0: i32) -> (i32, i32) {
    %c0_i32 = arith.constant 0 : i32
    %c0_i32_0 = arith.constant 0 : i32
    %c0_i32_1 = arith.constant 0 : i32
    return %c0_i32, %c0_i32_0 : i32, i32
  }
  func.func @transform_7(%arg0: i32) -> (i32, i32) {
    %c0_i32 = arith.constant 0 : i32
    %c0_i32_0 = arith.constant 0 : i32
    %c0_i32_1 = arith.constant 0 : i32
    return %c0_i32, %c0_i32_0 : i32, i32
  }
  func.func @transform_8(%arg0: i32) -> (i32, i32) {
    %c0_i32 = arith.constant 0 : i32
    %c0_i32_0 = arith.constant 0 : i32
    %c0_i32_1 = arith.constant 0 : i32
    return %c0_i32, %c0_i32_0 : i32, i32
  }
  func.func @transform_9(%arg0: i32) -> (i32, i32) {
    %c0_i32 = arith.constant 0 : i32
    %c0_i32_0 = arith.constant 0 : i32
    %c0_i32_1 = arith.constant 0 : i32
    return %c0_i32, %c0_i32_0 : i32, i32
  }
  func.func @transform_10(%arg0: i32) -> (i32, i32) {
    %c0_i32 = arith.constant 0 : i32
    %c0_i32_0 = arith.constant 0 : i32
    %c0_i32_1 = arith.constant 0 : i32
    return %c0_i32, %c0_i32_0 : i32, i32
  }
  func.func @transform_11(%arg0: i32) -> (i32, i32, i32) {
    %c0_i32 = arith.constant 0 : i32
    %c0_i32_0 = arith.constant 0 : i32
    %c0_i32_1 = arith.constant 0 : i32
    return %arg0, %c0_i32, %c0_i32_0 : i32, i32, i32
  }
}

</mosaic_0001>

<bundles_post_ra>
// kernel: net_forward.1
= control target key start
LH: loop header
LB: loop body
LE: loop exit
PB: predicated region body
PF: predicated region fallthrough
CT: control target
= control target key end

     0   :  { %16 = vsyncpa [#allocation5], 0  ;;  %s5093_s0 = inlined_call_operand.vmem [shape: bf16[2,32,96], index: 0, kind: input, shape index: {}]   ;;  %s5094_s1 = inlined_call_operand.vmem [shape: bf16[5,96,256], index: 1, kind: input, shape index: {}]   ;;  %s5095_s2 = inlined_call_operand.vmem [shape: f32[1,128], index: 2, kind: input, shape index: {}]   ;;  %s5096_s3 = inlined_call_operand.vmem [shape: bf16[5,128,256], index: 3, kind: input, shape index: {}]   ;;  %s5097_s4 = inlined_call_operand.vmem [shape: f32[1,128], index: 4, kind: input, shape index: {}]   ;;  %s5098_s5 = inlined_call_operand.vmem [shape: f32[5,128,8], index: 5, kind: input, shape index: {}]   ;;  %s5099_s6 = inlined_call_operand.vmem [shape: f32[1,8], index: 6, kind: input, shape index: {}]   ;;  %s5100_s7 = inlined_call_operand.vmem [shape: f32[8,16], index: 7, kind: input, shape index: {}]   ;;  %s5101_s8 = inlined_call_operand.vmem [shape: f32[1,16], index: 8, kind: input, shape index: {}]   ;;  %s5102_s9 = inlined_call_operand.vmem [shape: f32[16,10], index: 9, kind: input, shape index: {}]   ;;  %s5103_s10 = inlined_call_operand.vmem [shape: f32[1,10], index: 10, kind: input, shape index: {}]   ;;  %s5104_s11 = inlined_call_operand.hbm [shape: f32[2,1,10], index: 11, kind: output, shape index: {}]  }
   0x1   :  { %18 = vsyncpa [#allocation5 + $0x1], 0  ;;  %s4150_s17 = smov 0   ;;  %s4152_s18 = smov 0  }
   0x2   :  { %s4154_s19 = smov 0   ;;  %s4156_s20 = smov 0  }
   0x3 LB: > { %s4171_s21 = sadd.s32 4294967295, %s4082_s20   ;;  %s2916_s22 = sadd.s32 4294967294, %s4082_s20   ;;  %s4082_s20 = sphi %s4156_s20, %s5114_s20   ;;  %s4078_s19 = sphi %s4154_s19, %s5113_s19   ;;  %s4074_s18 = sphi %s4152_s18, %s5112_s18   ;;  %s4070_s17 = sphi %s4150_s17, %s5111_s17  }
   0x4   : > { %s4175_s23 = sadd.s32 1, %s4082_s20   ;;  %s267_s24 = sadd.s32 1, %s4078_s19 }
   0x5   : > { %s264_s25 = ssub.s32 %s4082_s20, %s4175_s23  ;;  %p277_p0 = scmp.ne.s32.totalorder %s4078_s19, %s4074_s18 }
   0x6   : > { %p265_p1 = scmp.eq.s32.totalorder %s264_s25, 0  ;;  %p278_p2 = scmp.eq.s32.totalorder %s4171_s21, 1 }
   0x7   : > { %p283_p3 = scmp.ne.s32.totalorder %s4074_s18, %s4070_s17  ;;  %p284_p4 = scmp.eq.s32.totalorder %s2916_s22, 1 }
   0x8   : > { %s4186_s26 = scalar_select %p265_p1, %s4078_s19, %s267_s24  }
   0x9   : > { %p4188_p5 = por %p278_p2, %p277_p0  ;;  %p4192_p6 = por %p284_p4, %p283_p3 }
   0xa   : > { %5105 = sst [smem:[#allocation7_spill]] %s4186_s26  ;;  %p2919_p7 = scmp.ge.s32.totalorder %s4082_s20, 1 }
   0xb   : > { %p340_p8 = scmp.lt.s32.totalorder %s4082_s20, 3 }
   0xd   : > { %p341_p9 = pnand %p2919_p7, %p340_p8 }
   0xe   : > { %v3804_v0 = vld [vmem:[%s5094_s1 + $0x64] ss:$8 sps:$4 sm:$0xff] (!%p341_p9)   ;;  %p379_p10 = scmp.lt.s32.totalorder (!%p341_p9), %s4171_s21, 1  ;;  %v3806_v1 = vld [vmem:[%s5094_s1 + $0x60] ss:$8 sps:$4 sm:$0xff] (!%p341_p9)   ;;  %v4084_v2 = vmov (!%p341_p9), 0  }
   0xf   : > { %344 = sbr.rel (%p341_p9) target bundleno = 1917 (0x77d), region = 64  ;;  %540 = vmatprep.mubr.bf16.mxu0 (!%p341_p9), %v4084_v2  ;;  %508 = vmatprep.subr.bf16.mxu0 (!%p341_p9), %v3804_v0  ;;  %v3807_v3 = vld [vmem:[%s5094_s1 + $0x74] ss:$8 sps:$4 sm:$0xff] (!%p341_p9)   ;;  %v3809_v4 = vld [vmem:[%s5094_s1 + $0x70] ss:$8 sps:$4 sm:$0xff] (!%p341_p9)   ;;  %vm501_vm1 = vcmask (!%p341_p9), 785408  }
  0x10   : > { %509 = vmatpush1.bf16.msra.mxu0 (!%p341_p9), %v3806_v1  ;;  %v3810_v5 = vld [vmem:[%s5094_s1 + $0x84] ss:$8 sps:$4 sm:$0xff] (!%p341_p9)   ;;  %v3812_v6 = vld [vmem:[%s5094_s1 + $0x80] ss:$8 sps:$4 sm:$0xff] (!%p341_p9)   ;;  %v3813_v7 = vld [vmem:[%s5094_s1 + $0x94] ss:$8 sps:$4 sm:$0xff] (!%p341_p9)  }
  0x11   : > { %510 = vmatprep.subr.bf16.mxu0 (!%p341_p9), %v3807_v3  ;;  %v3815_v14 = vld [vmem:[%s5094_s1 + $0x90] ss:$8 sps:$4 sm:$0xff] (!%p341_p9)   ;;  %v3816_v17 = vld [vmem:[%s5094_s1 + $0xa4] ss:$8 sps:$4 sm:$0xff] (!%p341_p9)   ;;  %v3818_v19 = vld [vmem:[%s5094_s1 + $0xa0] ss:$8 sps:$4 sm:$0xff] (!%p341_p9)  }
  0x12   : > { %v3819_v23 = vld [vmem:[%s5094_s1 + $0xb4] ss:$8 sps:$4 sm:$0xff] (!%p341_p9)   ;;  %v3821_v24 = vld [vmem:[%s5094_s1 + $0xb0] ss:$8 sps:$4 sm:$0xff] (!%p341_p9)   ;;  %v3824_v27 = vld [vmem:[%s5094_s1 + $0x4] ss:$8 sps:$4 sm:$0xff] (!%p341_p9)  }
  0x13   : > { %vm425_vm0 = vsmask.f32 (!%p341_p9), 7424  ;;  %v3822_v28 = vld [vmem:[%s5094_s1] ss:$8 sps:$4 sm:$0xff] (!%p341_p9)   ;;  %v3830_v30 = vld [vmem:[%s5094_s1 + $0x14] ss:$8 sps:$4 sm:$0xff] (!%p341_p9)  }
  0x14   : > { %511 = vmatpush1.bf16.msra.mxu0 (!%p341_p9), %v3809_v4  ;;  %v3828_v32 = vld [vmem:[%s5094_s1 + $0x10] ss:$8 sps:$4 sm:$0xff] (!%p341_p9)   ;;  %v3833_v33 = vld [vmem:[%s5094_s1 + $0x24] ss:$8 sps:$4 sm:$0xff] (!%p341_p9)   ;;  %v3831_v35 = vld [vmem:[%s5094_s1 + $0x20] ss:$8 sps:$4 sm:$0xff] (!%p341_p9)  }
  0x15   : > { %512 = vmatprep.subr.bf16.mxu0 (!%p341_p9), %v3810_v5  ;;  %v3836_v36 = vld [vmem:[%s5094_s1 + $0x34] ss:$8 sps:$4 sm:$0xff] (!%p341_p9)   ;;  %v3834_v37 = vld [vmem:[%s5094_s1 + $0x30] ss:$8 sps:$4 sm:$0xff] (!%p341_p9)   ;;  %v3839_v38 = vld [vmem:[%s5094_s1 + $0x44] ss:$8 sps:$4 sm:$0xff] (!%p341_p9)  }
  0x16   : > { %s380_s16 = scalar_select %p379_p10, %s4171_s21, 1  ;;  %v3837_v39 = vld [vmem:[%s5094_s1 + $0x40] ss:$8 sps:$4 sm:$0xff]   ;;  %v3842_v40 = vld [vmem:[%s5094_s1 + $0x54] ss:$8 sps:$4 sm:$0xff]   ;;  %vm1009_vm2 = vcmask 1045504  }
  0x17   : > { %v3840_v41 = vld [vmem:[%s5094_s1 + $0x50] ss:$8 sps:$4 sm:$0xff]   ;;  %v3845_v42 = vld [vmem:[%s5094_s1 + $0xc4] ss:$8 sps:$4 sm:$0xff]   ;;  %v3843_v46 = vld [vmem:[%s5094_s1 + $0xc0] ss:$8 sps:$4 sm:$0xff]  }
  0x18   : > { %s3279_s30 = sshll.u32 %s380_s16, 4  ;;  %513 = vmatpush1.bf16.msra.mxu0 %v3812_v6  ;;  %v3848_v48 = vld [vmem:[%s5094_s1 + $0xd4] ss:$8 sps:$4 sm:$0xff]   ;;  %v3846_v50 = vld [vmem:[%s5094_s1 + $0xd0] ss:$8 sps:$4 sm:$0xff]   ;;  %vm699_vm3 = vcmask 1046528  }
  0x19   : > { %s4219_s26 = scalar_lea.vmem %s5093_s0, %s3279_s30  ;;  %514 = vmatprep.subr.bf16.mxu0 %v3813_v7  ;;  %v3851_v52 = vld [vmem:[%s5094_s1 + $0xe4] ss:$8 sps:$4 sm:$0xff]   ;;  %v3849_v53 = vld [vmem:[%s5094_s1 + $0xe0] ss:$8 sps:$4 sm:$0xff]   ;;  %v3854_v54 = vld [vmem:[%s5094_s1 + $0xf4] ss:$8 sps:$4 sm:$0xff]  }
  0x1a   : > { %v385_v8 = vld [vmem:[%s4219_s26] sm:$0xf]  ;;  %v4229_v9 = vld [vmem:[%s4219_s26 + $0x4] sm:$0xf]  ;;  %v4232_v10 = vld [vmem:[%s4219_s26 + $0x8] sm:$0xf] }
  0x1b   : > { %v401_v11 = vld [vmem:[%s4219_s26 + $0xc] sm:$0x7]  ;;  %v4236_v12 = vcombine.low %v385_v8, %v4229_v9  ;;  %v992_v43 = vld [vmem:[%s4219_s26] sm:$0xc]  ;;  %v3852_v56 = vld [vmem:[%s5094_s1 + $0xf0] ss:$8 sps:$4 sm:$0xff]  }
  0x1c   : > { %v830_v13 = vld [vmem:[%s4219_s26 + $0xc] sm:$0xf]  ;;  %v4243_v15 = vcombine.low %v4232_v10, %v401_v11  ;;  %515 = vmatpush1.bf16.msra.mxu0 %v3815_v14  ;;  %v3031_v44 = vcombine.low %v992_v43, %v4229_v9  ;;  %v682_v58 = vld [vmem:[%s4219_s26] sm:$0xe]  ;;  %v3861_v60 = vld [vmem:[%s5094_s1 + $0x114] ss:$8 sps:$4 sm:$0xff]  }
  0x1d   : > { %v4246_v16 = vcombine.low %v4232_v10, %v830_v13  ;;  %v429_v18 = vshll.u32 %v4236_v12, 16  ;;  %v427_v20 = vshrl.u32 %v4236_v12, 16  ;;  %516 = vmatprep.subr.bf16.mxu0 %v3816_v17  ;;  %v388_v51 = vld [vmem:[%s4219_s26 + $0xc] sm:$0x3]  ;;  %v3855_v59 = vld [vmem:[%s5094_s1 + $0x100] ss:$8 sps:$4 sm:$0xff]   ;;  %v2977_v61 = vcombine.low %v682_v58, %v4229_v9 }
  0x1e   : > { %v434_v22 = vshll.u32 %v4243_v15, 16  ;;  %v438_v31 = vshrl.u32 %v4243_v15, 16  ;;  %v1010_v47 = vrot.slane %v3031_v44, 2  ;;  %v2950_v55 = vcombine.low %v4232_v10, %v388_v51  ;;  %v3857_v57 = vld [vmem:[%s5094_s1 + $0x104] ss:$8 sps:$4 sm:$0xff]   ;;  %s377_s13 = sand.u32 1, %s4074_s18  }
  0x1f   : > { %v431_v21 = vrot.slane %v429_v18, 1  ;;  %v1011_v45 = vrot.slane %v4246_v16, 2  ;;  %v3859_v62 = vld [vmem:[%s5094_s1 + $0x110] ss:$8 sps:$4 sm:$0xff]   ;;  %v3864_v63 = vld [vmem:[%s5094_s1 + $0x124] ss:$8 sps:$4 sm:$0xff]  }
  0x20   : > { %517 = vmatpush1.bf16.msra.mxu0 %v3818_v19  ;;  %v436_v26 = vrot.slane %v434_v22, 1  ;;  %v700_v0 = vrot.slane %v2977_v61, 1  ;;  %v701_v1 = vrot.slane %v4243_v15, 1  ;;  %v3862_v3 = vld [vmem:[%s5094_s1 + $0x120] ss:$8 sps:$4 sm:$0xff]   ;;  %v849_v11 = vshrl.u32 %v2977_v61, 16 }
  0x21   : > { %v432_v25 = vor.u32 %v431_v21, %v427_v20  ;;  %518 = vmatprep.subr.bf16.mxu0 %v3819_v23  ;;  %v4318_v49 = vsel %vm1009_vm2, %v1010_v47, %v1011_v45  ;;  %v3868_v5 = vld [vmem:[%s5094_s1 + $0x134] ss:$8 sps:$4 sm:$0xff]   ;;  %v3866_v6 = vld [vmem:[%s5094_s1 + $0x130] ss:$8 sps:$4 sm:$0xff]   ;;  %v3871_v7 = vld [vmem:[%s5094_s1 + $0x144] ss:$8 sps:$4 sm:$0xff]  }
  0x22   : > { %v440_v34 = vor.u32 %v438_v31, %v436_v26  ;;  %v702_v4 = vsel %vm699_vm3, %v700_v0, %v701_v1  ;;  %v3869_v8 = vld [vmem:[%s5094_s1 + $0x140] ss:$8 sps:$4 sm:$0xff]   ;;  %v3874_v9 = vld [vmem:[%s5094_s1 + $0x154] ss:$8 sps:$4 sm:$0xff]   ;;  %v3872_v10 = vld [vmem:[%s5094_s1 + $0x150] ss:$8 sps:$4 sm:$0xff]  }
  0x23   : > { %v437_v29 = vsel %vm425_vm0, %v432_v25, %v436_v26  ;;  %v857_v13 = vshrl.u32 %v4246_v16, 16  ;;  %v860_v14 = vshll.u32 %v4246_v16, 16  ;;  %v3877_v15 = vld [vmem:[%s5094_s1 + $0x164] ss:$8 sps:$4 sm:$0xff]   ;;  %v3875_v17 = vld [vmem:[%s5094_s1 + $0x160] ss:$8 sps:$4 sm:$0xff]  }
  0x24   : > { %519 = vmatpush1.bf16.msra.mxu0 %v3821_v24  ;;  %v851_v18 = vrot.slane %v849_v11, 1  ;;  %v3880_v22 = vld [vmem:[%s5094_s1 + $0x174] ss:$8 sps:$4 sm:$0xff]   ;;  %v3878_v23 = vld [vmem:[%s5094_s1 + $0x170] ss:$8 sps:$4 sm:$0xff]   ;;  %vm1168_vm5 = vcmask 1043456  }
  0x25   : > { %629 = vmatprep.subr.bf16.mxu0 %v3824_v27  ;;  %v859_v20 = vrot.slane %v857_v13, 1  ;;  %v862_v21 = vrot.slane %v860_v14, 2  ;;  %v3883_v26 = vld [vmem:[%s5094_s1 + $0x184] ss:$8 sps:$4 sm:$0xff]   ;;  %vm847_vm4 = vsmask.f32 6400 }
  0x26   : > { %v3881_v27 = vld [vmem:[%s5094_s1 + $0x180] ss:$8 sps:$4 sm:$0xff]   ;;  %v3889_v31 = vld [vmem:[%s5094_s1 + $0x1a4] ss:$8 sps:$4 sm:$0xff]   ;;  %vm4086_vm6 = vmmov 1   ;;  %vm1161_vm9 = vcmask 228352  }
  0x27   : > { %2948 = vmatmul.mubr.msk.bf16.vlgmr.msra.gmra.mrb[0].mxu0 %vm501_vm1, %v437_v29  ;;  %v863_v25 = vor.u32 %v862_v21, %v859_v20  ;;  %v3886_v29 = vld [vmem:[%s5094_s1 + $0x194] ss:$8 sps:$4 sm:$0xff]   ;;  %vm4448_vm7 = vmpackc.low %vm1168_vm5, %vm4086_vm6  ;;  %v3900_v0 = vld [vmem:[%s5096_s3 + $0x80] ss:$8 sps:$4 sm:$0xff]   ;;  %vm2083_vm13 = vcmask 1041408   ;;  %vm2080_vm15 = vcmask 80896  }
  0x28   : > { %630 = vmatpush1.bf16.msra.mxu0 %v3822_v28  ;;  %550 = vmatprep.mubr.bf16.mxu0 %v4084_v2  ;;  %v3917_v11 = vld [vmem:[%s5096_s3 + $0xd4] ss:$8 sps:$4 sm:$0xff]   ;;  %v3920_v13 = vld [vmem:[%s5096_s3 + $0xe4] ss:$8 sps:$4 sm:$0xff]   ;;  %v3918_v14 = vld [vmem:[%s5096_s3 + $0xe0] ss:$8 sps:$4 sm:$0xff]  }
  0x29   : > { %631 = vmatprep.subr.bf16.mxu0 %v3830_v30  ;;  %v3884_v30 = vld [vmem:[%s5094_s1 + $0x190] ss:$8 sps:$4 sm:$0xff]   ;;  %vm3578_vm14 = vmpackc.low %vm2083_vm13, %vm4086_vm6  ;;  %vm4088_vm0 = vmmov 0   ;;  %vm2772_vm2 = vcmask 130048   ;;  %s3276_s26 = sshll.u32 %s4171_s21, 4  ;;  %s378_s22 = scalar_lea.vmem [#allocation4], %s377_s13 }
  0x2a   : > { %s2861_s24 = sshll.u32 %s378_s22, 4  ;;  %vm2846_vm3 = vcmask 73728   ;;  %s5051_s29 = scalar_lea.hbm %s5104_s11, %s3276_s26  ;;  %s5053_s24 = int_to_ptr.vmem [resolvable:$true] %s2861_s24 }
  0x2b   : > { %s2849_s30 = scalar_lea.sflag [#allocation5], %s377_s13  ;;  %s4020_s12 = scalar_lea.vmem %s5053_s24, 16 }
  0x2c   : > { %632 = vmatpush1.bf16.msra.mxu0 %v3828_v32  ;;  %v3887_v32 = vld [vmem:[%s5094_s1 + $0x1a0] ss:$8 sps:$4 sm:$0xff]   ;;  %p4021_p11 = scmp.ne.s32.totalorder %s5053_s24, %s4020_s12  ;;  %s4089_s21 = smov [#allocation4]  }
  0x2d   : > { %633 = vmatprep.subr.bf16.mxu0 %v3833_v33  ;;  %v3892_v33 = vld [vmem:[%s5094_s1 + $0x1b4] ss:$8 sps:$4 sm:$0xff]   ;;  %s4024_s14 = sshll.u32 %s4089_s21, 4  ;;  %s4025_s14 = int_to_ptr.vmem [resolvable:$false] %s4024_s14 }
  0x2e   : > { %p4022_p12 = pnand %p4021_p11, %p4188_p5  ;;  %s4026_s15 = scalar_lea.vmem %s4025_s14, 32 }
  0x2f   : > { %2949 = vmatmul.mubr.msk.bf16.gmra.mrb[4].mxu0 %vm501_vm1, %v440_v34  ;;  %v3890_v34 = vld [vmem:[%s5094_s1 + $0x1b0] ss:$8 sps:$4 sm:$0xff]   ;;  %p4027_p0 = scmp.lt.s32.totalorder %s5053_s24, %s4025_s14  ;;  %p4028_p1 = scmp.lt.s32.totalorder %s4026_s15, %s4020_s12 }
  0x30   : > { %634 = vmatpush1.bf16.msra.mxu0 %v3831_v35  ;;  %661 = vmatprep.mubr.bf16.mxu0 %v4084_v2  ;;  %v3895_v35 = vld [vmem:[%s5094_s1 + $0x1c4] ss:$8 sps:$4 sm:$0xff]   ;;  %p4023_p13 = pneg %p4022_p12 }
  0x31   : > { %635 = vmatprep.subr.bf16.mxu0 %v3836_v36  ;;  %v3893_v36 = vld [vmem:[%s5094_s1 + $0x1c0] ss:$8 sps:$4 sm:$0xff]   ;;  %p4029_p2 = por %p4028_p1, %p4027_p0 }
  0x33   : > { %p4030_p3 = pnand %p4029_p2, %p4023_p13 }
  0x34   : > { %636 = vmatpush1.bf16.msra.mxu0 %v3834_v37  ;;  %v3898_v37 = vld [vmem:[%s5094_s1 + $0x1d4] ss:$8 sps:$4 sm:$0xff]  }
  0x35   : > { %637 = vmatprep.subr.bf16.mxu0 %v3839_v38  ;;  %v3896_v38 = vld [vmem:[%s5094_s1 + $0x1d0] ss:$8 sps:$4 sm:$0xff]  }
  0x38   : > { %638 = vmatpush1.bf16.msra.mxu0 %v3837_v39  ;;  %v4085_v39 = vmov 0.0  }
  0x39   : > { %639 = vmatprep.subr.bf16.mxu0 %v3842_v40  ;;  %1239 = vmatprep.mubr.f32.mxu1 %v4085_v39 }
  0x3c   : > { %640 = vmatpush1.bf16.msra.mxu0 %v3840_v41  ;;  %v1140_v41 = vlaneseq }
  0x3d   : > { %769 = vmatprep.subr.bf16.mxu0 %v3845_v42 }
  0x3e   : > { %v1144_v16 = vand.u32 127, %v1140_v41 }
  0x3f   : > { %2963 = vmatmul.mubr.msk.bf16.vlgmr.msra.gmra.mrb[0].mxu0 %vm501_vm1, %v4236_v12  ;;  %v852_v12 = vshll.u32 %v2977_v61, 16 }
  0x40   : > { %770 = vmatpush1.bf16.msra.mxu0 %v3843_v46  ;;  %671 = vmatprep.mubr.bf16.mxu0 %v4084_v2 }
  0x41   : > { %771 = vmatprep.subr.bf16.mxu0 %v3848_v48  ;;  %v854_v19 = vrot.slane %v852_v12, 2  ;;  %v1141_v48 = vshrl.u32 %v1140_v41, 7  ;;  %v3915_v12 = vld [vmem:[%s5096_s3 + $0xd0] ss:$8 sps:$4 sm:$0xff]  }
  0x43   : > { %v855_v24 = vor.u32 %v854_v19, %v851_v18  ;;  %v3926_v18 = vld [vmem:[%s5096_s3 + $0x4] ss:$8 sps:$4 sm:$0xff]  }
  0x44   : > { %772 = vmatpush1.bf16.msra.mxu0 %v3846_v50  ;;  %v1145_v50 = vmul.u32 2, %v1141_v48 }
  0x45   : > { %773 = vmatprep.subr.bf16.mxu0 %v3851_v52  ;;  %v864_v28 = vsel %vm847_vm4, %v855_v24, %v863_v25 }
  0x46   : > { %vm1147_vm8 = vcmp.eq.s32.totalorder %v1144_v16, %v1145_v50 }
  0x47   : > { %2964 = vmatmul.mubr.msk.bf16.gmra.mrb[4].mxu0 %vm501_vm1, %v2950_v55  ;;  %v4457_v58 = vsel %vm1147_vm8, 1.0, %v4085_v39  ;;  %v3945_v55 = vld [vmem:[%s5096_s3 + $0x70] ss:$8 sps:$4 sm:$0xff]  }
  0x48   : > { %774 = vmatpush1.bf16.msra.mxu0 %v3849_v53  ;;  %801 = vmatprep.mubr.bf16.mxu0 %v4084_v2 }
  0x49   : > { %775 = vmatprep.subr.bf16.mxu0 %v3854_v54 }
  0x4c   : > { %776 = vmatpush1.bf16.msra.mxu0 %v3852_v56 }
  0x4d   : > { %777 = vmatprep.subr.bf16.mxu0 %v3857_v57 }
  0x50   : > { %778 = vmatpush1.bf16.msra.mxu0 %v3855_v59  ;;  %v1153_v59 = vadd.s32 1, %v1145_v50  ;;  %v3936_v50 = vld [vmem:[%s5096_s3 + $0x40] ss:$8 sps:$4 sm:$0xff]  }
  0x51   : > { %779 = vmatprep.subr.bf16.mxu0 %v3861_v60 }
  0x52   : > { %vm1155_vm11 = vcmp.eq.s32.totalorder %v1144_v16, %v1153_v59  ;;  %v3948_v59 = vld [vmem:[%s5096_s3 + $0x100] ss:$8 sps:$4 sm:$0xff]  }
  0x54   : > { %780 = vmatpush1.bf16.msra.mxu0 %v3859_v62  ;;  %v3902_v62 = vld [vmem:[%s5096_s3 + $0x84] ss:$8 sps:$4 sm:$0xff]  }
  0x55   : > { %931 = vmatprep.subr.bf16.mxu0 %v3864_v63  ;;  %v4473_v63 = vsel %vm1155_vm11, 1.0, %v4085_v39 }
  0x57   : > { %2990 = vmatmul.mubr.msk.bf16.vlgmr.msra.gmra.mrb[0].mxu0 %vm501_vm1, %v702_v4  ;;  %v3905_v4 = vld [vmem:[%s5096_s3 + $0x94] ss:$8 sps:$4 sm:$0xff]  }
  0x58   : > { %932 = vmatpush1.bf16.msra.mxu0 %v3862_v3  ;;  %811 = vmatprep.mubr.bf16.mxu0 %v4084_v2  ;;  %v3903_v3 = vld [vmem:[%s5096_s3 + $0x90] ss:$8 sps:$4 sm:$0xff]  }
  0x59   : > { %933 = vmatprep.subr.bf16.mxu0 %v3868_v5  ;;  %v3906_v5 = vld [vmem:[%s5096_s3 + $0xa0] ss:$8 sps:$4 sm:$0xff]  }
  0x5c   : > { %934 = vmatpush1.bf16.msra.mxu0 %v3866_v6  ;;  %v3908_v6 = vld [vmem:[%s5096_s3 + $0xa4] ss:$8 sps:$4 sm:$0xff]  }
  0x5d   : > { %935 = vmatprep.subr.bf16.mxu0 %v3871_v7  ;;  %v3911_v7 = vld [vmem:[%s5096_s3 + $0xb4] ss:$8 sps:$4 sm:$0xff]  }
  0x5f   : > { %2991 = vmatmul.mubr.msk.bf16.gmra.mrb[4].mxu0 %vm501_vm1, %v701_v1 }
  0x60   : > { %936 = vmatpush1.bf16.msra.mxu0 %v3869_v8  ;;  %963 = vmatprep.mubr.bf16.mxu0 %v4084_v2  ;;  %v3909_v8 = vld [vmem:[%s5096_s3 + $0xb0] ss:$8 sps:$4 sm:$0xff]  }
  0x61   : > { %937 = vmatprep.subr.bf16.mxu0 %v3874_v9  ;;  %v3914_v9 = vld [vmem:[%s5096_s3 + $0xc4] ss:$8 sps:$4 sm:$0xff]  }
  0x64   : > { %938 = vmatpush1.bf16.msra.mxu0 %v3872_v10  ;;  %v3912_v10 = vld [vmem:[%s5096_s3 + $0xc0] ss:$8 sps:$4 sm:$0xff]  }
  0x65   : > { %939 = vmatprep.subr.bf16.mxu0 %v3877_v15  ;;  %v3923_v15 = vld [vmem:[%s5096_s3 + $0xf4] ss:$8 sps:$4 sm:$0xff]  }
  0x68   : > { %940 = vmatpush1.bf16.msra.mxu0 %v3875_v17  ;;  %v3921_v17 = vld [vmem:[%s5096_s3 + $0xf0] ss:$8 sps:$4 sm:$0xff]  }
  0x69   : > { %941 = vmatprep.subr.bf16.mxu0 %v3880_v22 }
  0x6c   : > { %942 = vmatpush1.bf16.msra.mxu0 %v3878_v23 }
  0x6d   : > { %1079 = vmatprep.subr.bf16.mxu0 %v3883_v26 }
  0x6f   : > { %3017 = vmatmul.mubr.msk.bf16.vlgmr.msra.gmra.mrb[0].mxu0 %vm501_vm1, %v864_v28 }
  0x70   : > { %1080 = vmatpush1.bf16.msra.mxu0 %v3881_v27  ;;  %973 = vmatprep.mubr.bf16.mxu0 %v4084_v2  ;;  %v3058_v27 = vld [vmem:[%s5095_s2] ss:$0 sm:$0xff] }
  0x71   : > { %1081 = vmatprep.subr.bf16.mxu0 %v3886_v29 }
  0x74   : > { %1082 = vmatpush1.bf16.msra.mxu0 %v3884_v30 }
  0x75   : > { %1083 = vmatprep.subr.bf16.mxu0 %v3889_v31 }
  0x77   : > { %3018 = vmatmul.mubr.msk.bf16.gmra.mrb[4].mxu0 %vm501_vm1, %v863_v25 }
  0x78   : > { %1084 = vmatpush1.bf16.msra.mxu0 %v3887_v32  ;;  %1111 = vmatprep.mubr.bf16.mxu0 %v4084_v2 }
  0x79   : > { %1085 = vmatprep.subr.bf16.mxu0 %v3892_v33 }
  0x7c   : > { %1086 = vmatpush1.bf16.msra.mxu0 %v3890_v34 }
  0x7d   : > { %1087 = vmatprep.subr.bf16.mxu0 %v3895_v35 }
  0x80   : > { %1088 = vmatpush1.bf16.msra.mxu0 %v3893_v36 }
  0x81   : > { %1089 = vmatprep.subr.bf16.mxu0 %v3898_v37 }
  0x84   : > { %1090 = vmatpush1.bf16.msra.mxu0 %v3896_v38  ;;  %v3924_v38 = vld [vmem:[%s5096_s3] ss:$8 sps:$4 sm:$0xff]  }
  0x87   : > { %3044 = vmatmul.mubr.msk.bf16.vlgmr.msra.gmra.mrb[0].mxu0 %vm501_vm1, %v4318_v49 }
  0x88   : > { %1121 = vmatprep.mubr.bf16.mxu0 %v4084_v2 }
  0x8f   : > { %3045 = vmatmul.mubr.msk.bf16.gmra.mrb[4].mxu0 %vm501_vm1, %v1011_v45  ;;  %v1142_v45 = vadd.s32 8, %v1141_v48  ;;  %v3935_v48 = vld [vmem:[%s5096_s3 + $0x34] ss:$8 sps:$4 sm:$0xff]   ;;  %vm2694_vm1 = vcmask 64512  }
  0x90   : > { %2154 = vmatprep.mubr.f32.mxu0 %v4085_v39 }
  0x91   : > { %v1146_v57 = vmul.u32 2, %v1142_v45  ;;  %v3941_v45 = vld [vmem:[%s5096_s3 + $0x54] ss:$8 sps:$4 sm:$0xff]  }
  0x93   : > { %vm1148_vm10 = vcmp.eq.s32.totalorder %v1144_v16, %v1146_v57  ;;  %v1154_v61 = vadd.s32 1, %v1146_v57 }
  0x94   : > { %v3047_v60 = vsel %vm1148_vm10, 1.0, %v4085_v39 }
  0x95   : > { %vm1156_vm12 = vcmp.eq.s32.totalorder %v1144_v16, %v1154_v61  ;;  %v3938_v16 = vld [vmem:[%s5096_s3 + $0x44] ss:$8 sps:$4 sm:$0xff]   ;;  %v3953_v61 = vld [vmem:[%s5096_s3 + $0x114] ss:$8 sps:$4 sm:$0xff]  }
  0x96   : > { %v3049_v1 = vsel %vm1156_vm12, 1.0, %v4085_v39 }
 0x15a   : > { %v1113_v40 = vpop.f32.mrb[0].mxu0 }
 0x15b   : > { %v1115_v42 = vpop.f32.mrb[1].mxu0 }
 0x15c   : > { %v1117_v43 = vpop.f32.mrb[2].mxu0 }
 0x15d   : > { %v3559_v44 = vpack.c.bf16 %v1117_v43, %v1113_v40  ;;  %v1119_v46 = vpop.f32.mrb[3].mxu0  ;;  %v3929_v43 = vld [vmem:[%s5096_s3 + $0x14] ss:$8 sps:$4 sm:$0xff]  }
 0x15e   : > { %v3557_v47 = vpack.c.bf16 %v1119_v46, %v1115_v42  ;;  %v3932_v46 = vld [vmem:[%s5096_s3 + $0x24] ss:$8 sps:$4 sm:$0xff]  }
 0x160   : > { %3558 = vmatprep.subr.bf16.mxu1 %v3557_v47 }
 0x161   : > { %3560 = vmatpush1.bf16.msra.mxu1 %v3559_v44 }
 0x162   : > { %v1123_v49 = vpop.f32.mrb[4].mxu0 }
 0x163   : > { %v1125_v51 = vpop.f32.mrb[5].mxu0 }
 0x164   : > { %v1127_v52 = vpop.f32.mrb[6].mxu0 }
 0x165   : > { %v3564_v53 = vpack.c.bf16 %v1127_v52, %v1123_v49  ;;  %v1129_v54 = vpop.f32.mrb[7].mxu0  ;;  %v3933_v49 = vld [vmem:[%s5096_s3 + $0x30] ss:$8 sps:$4 sm:$0xff]   ;;  %v3944_v52 = vld [vmem:[%s5096_s3 + $0x64] ss:$8 sps:$4 sm:$0xff]  }
 0x166   : > { %v3561_v56 = vpack.c.bf16 %v1129_v54, %v1125_v51  ;;  %v3939_v51 = vld [vmem:[%s5096_s3 + $0x50] ss:$8 sps:$4 sm:$0xff]   ;;  %v3947_v54 = vld [vmem:[%s5096_s3 + $0x74] ss:$8 sps:$4 sm:$0xff]  }
 0x168   : > { %3563 = vmatprep.subr.msk.bf16.mxu1 %vm4448_vm7, %v3561_v56 }
 0x169   : > { %3566 = vmatpush1.bf16.msk.msra.mxu1 %vm4448_vm7, %v3564_v53 }
 0x16a   : > { %3568 = vmatprep.subr.bf16.mxu1 %v3557_v47  ;;  %v3930_v47 = vld [vmem:[%s5096_s3 + $0x20] ss:$8 sps:$4 sm:$0xff]  }
 0x16c   : > { %3052 = vmatmul.mubr.msk.f32.vlgmr.msra.gmra.mrb[0].mxu1 %vm1161_vm9, %v4457_v58 }
 0x16d   : > { %3570 = vmatpush1.bf16.msra.mxu1 %v3559_v44  ;;  %1245 = vmatprep.mubr.f32.mxu1 %v4085_v39  ;;  %v3927_v44 = vld [vmem:[%s5096_s3 + $0x10] ss:$8 sps:$4 sm:$0xff]  }
 0x16e   : > { %3573 = vmatprep.subr.msk.bf16.mxu1 %vm4448_vm7, %v3561_v56  ;;  %v3950_v56 = vld [vmem:[%s5096_s3 + $0x104] ss:$8 sps:$4 sm:$0xff]  }
 0x170   : > { %3053 = vmatmul.mubr.msk.f32.gmra.mrb[2].mxu1 %vm1161_vm9, %v3047_v60 }
 0x171   : > { %3576 = vmatpush1.bf16.msk.msra.mxu1 %vm4448_vm7, %v3564_v53  ;;  %1322 = vmatprep.mubr.f32.mxu1 %v4085_v39  ;;  %v3942_v53 = vld [vmem:[%s5096_s3 + $0x60] ss:$8 sps:$4 sm:$0xff]  }
 0x172   : > { %1473 = vmatprep.subr.bf16.mxu1 %v3902_v62  ;;  %v3951_v62 = vld [vmem:[%s5096_s3 + $0x110] ss:$8 sps:$4 sm:$0xff]  }
 0x174   : > { %3056 = vmatmul.mubr.msk.f32.vlgmr.msra.gmra.mrb[4].mxu1 %vm1161_vm9, %v4473_v63 }
 0x175   : > { %1328 = vmatprep.mubr.f32.mxu1 %v4085_v39  ;;  %1474 = vmatpush1.bf16.msra.mxu1 %v3900_v0  ;;  %v3956_v0 = vld [vmem:[%s5096_s3 + $0x124] ss:$8 sps:$4 sm:$0xff]  }
 0x176   : > { %1475 = vmatprep.subr.bf16.mxu1 %v3905_v4  ;;  %v3957_v4 = vld [vmem:[%s5096_s3 + $0x130] ss:$8 sps:$4 sm:$0xff]  }
 0x178   : > { %3057 = vmatmul.mubr.msk.f32.gmra.mrb[6].mxu1 %vm1161_vm9, %v3049_v1  ;;  %v3954_v1 = vld [vmem:[%s5096_s3 + $0x120] ss:$8 sps:$4 sm:$0xff]  }
 0x179   : > { %1505 = vmatprep.mubr.bf16.mxu1 %v4084_v2  ;;  %1476 = vmatpush1.bf16.msra.mxu1 %v3903_v3  ;;  %v3959_v3 = vld [vmem:[%s5096_s3 + $0x134] ss:$8 sps:$4 sm:$0xff]  }
 0x17a   : > { %1477 = vmatprep.subr.bf16.mxu1 %v3908_v6  ;;  %v3960_v6 = vld [vmem:[%s5096_s3 + $0x140] ss:$8 sps:$4 sm:$0xff]  }
 0x17d   : > { %1478 = vmatpush1.bf16.msra.mxu1 %v3906_v5  ;;  %v3962_v5 = vld [vmem:[%s5096_s3 + $0x144] ss:$8 sps:$4 sm:$0xff]  }
 0x17e   : > { %1479 = vmatprep.subr.bf16.mxu1 %v3911_v7  ;;  %v3965_v7 = vld [vmem:[%s5096_s3 + $0x154] ss:$8 sps:$4 sm:$0xff]  }
 0x181   : > { %1480 = vmatpush1.bf16.msra.mxu1 %v3909_v8  ;;  %v3963_v8 = vld [vmem:[%s5096_s3 + $0x150] ss:$8 sps:$4 sm:$0xff]  }
 0x182   : > { %1481 = vmatprep.subr.bf16.mxu1 %v3914_v9  ;;  %v3968_v9 = vld [vmem:[%s5096_s3 + $0x164] ss:$8 sps:$4 sm:$0xff]  }
 0x185   : > { %1482 = vmatpush1.bf16.msra.mxu1 %v3912_v10  ;;  %v3966_v10 = vld [vmem:[%s5096_s3 + $0x160] ss:$8 sps:$4 sm:$0xff]  }
 0x186   : > { %1483 = vmatprep.subr.bf16.mxu1 %v3917_v11  ;;  %v3971_v11 = vld [vmem:[%s5096_s3 + $0x174] ss:$8 sps:$4 sm:$0xff]  }
 0x189   : > { %1484 = vmatpush1.bf16.msra.mxu1 %v3915_v12  ;;  %v3969_v12 = vld [vmem:[%s5096_s3 + $0x170] ss:$8 sps:$4 sm:$0xff]  }
 0x18a   : > { %1485 = vmatprep.subr.bf16.mxu1 %v3920_v13  ;;  %v3974_v13 = vld [vmem:[%s5096_s3 + $0x184] ss:$8 sps:$4 sm:$0xff]  }
 0x18d   : > { %1486 = vmatpush1.bf16.msra.mxu1 %v3918_v14 }
 0x18e   : > { %1487 = vmatprep.subr.bf16.mxu1 %v3923_v15 }
 0x191   : > { %1488 = vmatpush1.bf16.msra.mxu1 %v3921_v17  ;;  %v3972_v17 = vld [vmem:[%s5096_s3 + $0x180] ss:$8 sps:$4 sm:$0xff]  }
 0x192   : > { %1596 = vmatprep.subr.bf16.mxu1 %v3926_v18 }
 0x23f   : > { %v1241_v19 = vpop.f32.mrb[0].mxu1 }
 0x240   : > { %v1243_v20 = vpop.f32.mrb[1].mxu1 }
 0x243   : > { %v1247_v21 = vpop.f32.mrb[2].mxu1 }
 0x244   : > { %v1249_v22 = vpop.f32.mrb[3].mxu1 }
 0x247   : > { %v1324_v23 = vpop.f32.mrb[4].mxu1 }
 0x248   : > { %v1335_v24 = vmax.f32 %v1241_v19, %v1324_v23  ;;  %v1326_v25 = vpop.f32.mrb[5].mxu1  ;;  %v3977_v19 = vld [vmem:[%s5096_s3 + $0x194] ss:$8 sps:$4 sm:$0xff]  }
 0x249   : > { %v1336_v26 = vmax.f32 %v1243_v20, %v1326_v25  ;;  %v3975_v20 = vld [vmem:[%s5096_s3 + $0x190] ss:$8 sps:$4 sm:$0xff]   ;;  %v3983_v23 = vld [vmem:[%s5096_s3 + $0x1b4] ss:$8 sps:$4 sm:$0xff]   ;;  %v3986_v25 = vld [vmem:[%s5096_s3 + $0x1c4] ss:$8 sps:$4 sm:$0xff]  }
 0x24b   : > { %v1339_v28 = vmax.f32 %v1335_v24, %v1336_v26  ;;  %v1330_v29 = vpop.f32.mrb[6].mxu1  ;;  %v3981_v24 = vld [vmem:[%s5096_s3 + $0x1b0] ss:$8 sps:$4 sm:$0xff]   ;;  %v3984_v26 = vld [vmem:[%s5096_s3 + $0x1c0] ss:$8 sps:$4 sm:$0xff]  }
 0x24c   : > { %v1337_v30 = vmax.f32 %v1247_v21, %v1330_v29  ;;  %v1332_v31 = vpop.f32.mrb[7].mxu1  ;;  %v3980_v21 = vld [vmem:[%s5096_s3 + $0x1a4] ss:$8 sps:$4 sm:$0xff]  }
 0x24d   : > { %v1348_v32 = vadd.f32 %v3058_v27, %v1339_v28  ;;  %v1338_v33 = vmax.f32 %v1249_v22, %v1332_v31  ;;  %v3978_v22 = vld [vmem:[%s5096_s3 + $0x1a0] ss:$8 sps:$4 sm:$0xff]   ;;  %v3987_v28 = vld [vmem:[%s5096_s3 + $0x1d0] ss:$8 sps:$4 sm:$0xff]   ;;  %v3992_v29 = vld [vmem:[%s5096_s3 + $0x1e4] ss:$8 sps:$4 sm:$0xff]  }
 0x24e   : > { %v3995_v31 = vld [vmem:[%s5096_s3 + $0x1f4] ss:$8 sps:$4 sm:$0xff]  }
 0x24f   : > { %v1350_v34 = vmax.f32 %v1348_v32, 0.0  ;;  %v1340_v35 = vmax.f32 %v1337_v30, %v1338_v33  ;;  %v3990_v30 = vld [vmem:[%s5096_s3 + $0x1e0] ss:$8 sps:$4 sm:$0xff]   ;;  %v3993_v32 = vld [vmem:[%s5096_s3 + $0x1f0] ss:$8 sps:$4 sm:$0xff]  }
 0x250   : > { %v3998_v33 = vld [vmem:[%s5096_s3 + $0x204] ss:$8 sps:$4 sm:$0xff]  }
 0x251   : > { %1352 = vst [vmem:[#allocation2] sm:$0xff] %v1350_v34  ;;  %v1349_v36 = vadd.f32 %v3058_v27, %v1340_v35  ;;  %v3989_v27 = vld [vmem:[%s5096_s3 + $0x1d4] ss:$8 sps:$4 sm:$0xff]  }
 0x253   : > { %v1351_v37 = vmax.f32 %v1349_v36, 0.0  ;;  %v3996_v36 = vld [vmem:[%s5096_s3 + $0x200] ss:$8 sps:$4 sm:$0xff]  }
 0x255   : > { %1353 = vst [vmem:[#allocation2 + $0x8] sm:$0x3f] %v1351_v37 }
 0x25c   : > { %v1373_v40 = vld [vmem:[#allocation2 + $0x1] sm:$0xff]  ;;  %v1374_v41 = vld [vmem:[#allocation2 + $0x9] sm:$0x3]  ;;  %v1787_v35 = vld [vmem:[#allocation2 + $0xb] sm:$0x3] }
 0x25d   : > { %v1375_v42 = vpack.c.bf16 %v1374_v41, %v1373_v40  ;;  %v1355_v57 = vld [vmem:[#allocation2 + $0x8] sm:$0x3]  ;;  %v1640_v15 = vld [vmem:[#allocation2 + $0xa] sm:$0x3]  ;;  %v3999_v40 = vld [vmem:[%s5096_s3 + $0x210] ss:$8 sps:$4 sm:$0xff]  }
 0x25e   : > { %v1356_v60 = vpack.c.bf16 %v1355_v57, %v1350_v34  ;;  %v1639_v14 = vld [vmem:[#allocation2 + $0x2] sm:$0xff] }
 0x25f   : > { %1506 = vmatmul.mubr.bf16.vlgmr.msra.gmra.mrb[8].mxu1 %v1375_v42  ;;  %v1641_v18 = vpack.c.bf16 %v1640_v15, %v1639_v14  ;;  %v1786_v34 = vld [vmem:[#allocation2 + $0x3] sm:$0xff] }
 0x260   : > { %1597 = vmatpush1.bf16.msra.mxu1 %v3924_v38  ;;  %1628 = vmatprep.mubr.bf16.mxu1 %v4084_v2  ;;  %v1788_v37 = vpack.c.bf16 %v1787_v35, %v1786_v34  ;;  %v4001_v38 = vld [vmem:[%s5096_s3 + $0x214] ss:$8 sps:$4 sm:$0xff]   ;;  %v4004_v41 = vld [vmem:[%s5096_s3 + $0x224] ss:$8 sps:$4 sm:$0xff]   ;;  %v4002_v42 = vld [vmem:[%s5096_s3 + $0x220] ss:$8 sps:$4 sm:$0xff]  }
 0x261   : > { %1598 = vmatprep.subr.bf16.mxu1 %v3929_v43  ;;  %v4007_v43 = vld [vmem:[%s5096_s3 + $0x234] ss:$8 sps:$4 sm:$0xff]   ;;  %v3215_v15 = vld [vmem:[%s5098_s5 + $0xa8] sm:$0xff]  ;;  %v3222_v35 = vld [vmem:[%s5098_s5 + $0xe0] sm:$0xff] }
 0x264   : > { %1599 = vmatpush1.bf16.msra.mxu1 %v3927_v44  ;;  %v4010_v44 = vld [vmem:[%s5096_s3 + $0x244] ss:$8 sps:$4 sm:$0xff]  }
 0x265   : > { %1600 = vmatprep.subr.bf16.mxu1 %v3932_v46  ;;  %v4008_v46 = vld [vmem:[%s5096_s3 + $0x240] ss:$8 sps:$4 sm:$0xff]  }
 0x268   : > { %1601 = vmatpush1.bf16.msra.mxu1 %v3930_v47  ;;  %v4013_v47 = vld [vmem:[%s5096_s3 + $0x254] ss:$8 sps:$4 sm:$0xff]  }
 0x269   : > { %1602 = vmatprep.subr.bf16.mxu1 %v3935_v48  ;;  %v4011_v48 = vld [vmem:[%s5096_s3 + $0x250] ss:$8 sps:$4 sm:$0xff]  }
 0x26c   : > { %1603 = vmatpush1.bf16.msra.mxu1 %v3933_v49  ;;  %v4016_v49 = vld [vmem:[%s5096_s3 + $0x264] ss:$8 sps:$4 sm:$0xff]  }
 0x26d   : > { %1604 = vmatprep.subr.bf16.mxu1 %v3938_v16  ;;  %v4014_v16 = vld [vmem:[%s5096_s3 + $0x260] ss:$8 sps:$4 sm:$0xff]  }
 0x270   : > { %1605 = vmatpush1.bf16.msra.mxu1 %v3936_v50  ;;  %v4019_v50 = vld [vmem:[%s5096_s3 + $0x274] ss:$8 sps:$4 sm:$0xff]  }
 0x271   : > { %1606 = vmatprep.subr.bf16.mxu1 %v3941_v45  ;;  %v4017_v45 = vld [vmem:[%s5096_s3 + $0x270] ss:$8 sps:$4 sm:$0xff]  }
 0x274   : > { %1607 = vmatpush1.bf16.msra.mxu1 %v3939_v51  ;;  %v1933_v51 = vld [vmem:[#allocation2 + $0x4] sm:$0xff] }
 0x275   : > { %1608 = vmatprep.subr.bf16.mxu1 %v3944_v52  ;;  %v1934_v52 = vld [vmem:[#allocation2 + $0xc] sm:$0x3] }
 0x278   : > { %1609 = vmatpush1.bf16.msra.mxu1 %v3942_v53  ;;  %v1935_v53 = vpack.c.bf16 %v1934_v52, %v1933_v51  ;;  %v3209_v52 = vld [vmem:[%s5097_s4] ss:$0 sm:$0xff] }
 0x279   : > { %1610 = vmatprep.subr.bf16.mxu1 %v3947_v54  ;;  %v4087_v54 = vmov 0.0|0.0  }
 0x27c   : > { %1611 = vmatpush1.bf16.msra.mxu1 %v3945_v55  ;;  %v3226_v55 = vld [vmem:[%s5098_s5 + $0x100] sm:$0xff] }
 0x27d   : > { %1739 = vmatprep.subr.bf16.mxu1 %v3950_v56  ;;  %v3227_v56 = vld [vmem:[%s5098_s5 + $0x108] sm:$0xff] }
 0x27e   : > { %v3638_v57 = vpack.c.bf16 %v3227_v56, %v3226_v55 }
 0x27f   : > { %1629 = vmatmul.mubr.bf16.vlgmr.msra.gmra.mrb[8].mxu1 %v1356_v60  ;;  %v3229_v60 = vld [vmem:[%s5098_s5 + $0x118] sm:$0xff] }
 0x280   : > { %1740 = vmatpush1.bf16.msra.mxu1 %v3948_v59  ;;  %1771 = vmatprep.mubr.bf16.mxu1 %v4084_v2  ;;  %v3228_v59 = vld [vmem:[%s5098_s5 + $0x110] sm:$0xff] }
 0x281   : > { %1741 = vmatprep.subr.bf16.mxu1 %v3953_v61  ;;  %v3641_v61 = vpack.c.bf16 %v3229_v60, %v3228_v59  ;;  %v2249_v59 = vld [vmem:[%s5098_s5 + $0x8] sm:$0xff]  ;;  %v3258_v60 = vld [vmem:[%s5098_s5 + $0x200] sm:$0xff] }
 0x284   : > { %1742 = vmatpush1.bf16.msra.mxu1 %v3951_v62  ;;  %v3230_v62 = vld [vmem:[%s5098_s5 + $0x120] sm:$0xff] }
 0x285   : > { %1743 = vmatprep.subr.bf16.mxu1 %v3956_v0  ;;  %v3231_v0 = vld [vmem:[%s5098_s5 + $0x128] sm:$0xff] }
 0x288   : > { %1744 = vmatpush1.bf16.msra.mxu1 %v3954_v1  ;;  %v3644_v1 = vpack.c.bf16 %v3231_v0, %v3230_v62 }
 0x289   : > { %1745 = vmatprep.subr.bf16.mxu1 %v3959_v3 }
 0x28c   : > { %1746 = vmatpush1.bf16.msra.mxu1 %v3957_v4 }
 0x28d   : > { %1747 = vmatprep.subr.bf16.mxu1 %v3962_v5 }
 0x290   : > { %1748 = vmatpush1.bf16.msra.mxu1 %v3960_v6 }
 0x291   : > { %1749 = vmatprep.subr.bf16.mxu1 %v3965_v7 }
 0x294   : > { %1750 = vmatpush1.bf16.msra.mxu1 %v3963_v8 }
 0x295   : > { %1751 = vmatprep.subr.bf16.mxu1 %v3968_v9  ;;  %v3210_v9 = vld [vmem:[%s5098_s5 + $0x80] sm:$0xff] }
 0x298   : > { %1752 = vmatpush1.bf16.msra.mxu1 %v3966_v10  ;;  %v3211_v10 = vld [vmem:[%s5098_s5 + $0x88] sm:$0xff] }
 0x299   : > { %1753 = vmatprep.subr.bf16.mxu1 %v3971_v11  ;;  %v3590_v11 = vpack.c.bf16 %v3211_v10, %v3210_v9  ;;  %v2252_v10 = vld [vmem:[%s5098_s5 + $0x20] sm:$0xff] }
 0x29c   : > { %1754 = vmatpush1.bf16.msra.mxu1 %v3969_v12  ;;  %v3212_v12 = vld [vmem:[%s5098_s5 + $0x90] sm:$0xff] }
 0x29d   : > { %1886 = vmatprep.subr.bf16.mxu1 %v3974_v13  ;;  %v3213_v13 = vld [vmem:[%s5098_s5 + $0x98] sm:$0xff] }
 0x29e   : > { %v3593_v14 = vpack.c.bf16 %v3213_v13, %v3212_v12  ;;  %v3262_v12 = vld [vmem:[%s5098_s5 + $0x220] sm:$0xff]  ;;  %v3263_v13 = vld [vmem:[%s5098_s5 + $0x228] sm:$0xff] }
 0x29f   : > { %1772 = vmatmul.mubr.bf16.vlgmr.msra.gmra.mrb[8].mxu1 %v1641_v18  ;;  %v3217_v18 = vld [vmem:[%s5098_s5 + $0xb8] sm:$0xff] }
 0x2a0   : > { %1887 = vmatpush1.bf16.msra.mxu1 %v3972_v17  ;;  %1918 = vmatprep.mubr.bf16.mxu1 %v4084_v2 }
 0x2a1   : > { %1888 = vmatprep.subr.bf16.mxu1 %v3977_v19  ;;  %v3232_v19 = vld [vmem:[%s5098_s5 + $0x130] sm:$0xff] }
 0x2a4   : > { %1889 = vmatpush1.bf16.msra.mxu1 %v3975_v20 }
 0x2a5   : > { %1890 = vmatprep.subr.bf16.mxu1 %v3980_v21  ;;  %v3233_v21 = vld [vmem:[%s5098_s5 + $0x138] sm:$0xff] }
 0x2a8   : > { %1891 = vmatpush1.bf16.msra.mxu1 %v3978_v22  ;;  %v3647_v22 = vpack.c.bf16 %v3233_v21, %v3232_v19  ;;  %v2256_v21 = vld [vmem:[%s5098_s5 + $0x40] sm:$0xff] }
 0x2a9   : > { %1892 = vmatprep.subr.bf16.mxu1 %v3983_v23  ;;  %v3218_v23 = vld [vmem:[%s5098_s5 + $0xc0] sm:$0xff] }
 0x2ac   : > { %1893 = vmatpush1.bf16.msra.mxu1 %v3981_v24  ;;  %v3219_v24 = vld [vmem:[%s5098_s5 + $0xc8] sm:$0xff] }
 0x2ad   : > { %1894 = vmatprep.subr.bf16.mxu1 %v3986_v25  ;;  %v3234_v25 = vld [vmem:[%s5098_s5 + $0x140] sm:$0xff] }
 0x2b0   : > { %1895 = vmatpush1.bf16.msra.mxu1 %v3984_v26  ;;  %v3602_v26 = vpack.c.bf16 %v3219_v24, %v3218_v23  ;;  %v3266_v23 = vld [vmem:[%s5098_s5 + $0x240] sm:$0xff]  ;;  %v3267_v24 = vld [vmem:[%s5098_s5 + $0x248] sm:$0xff] }
 0x2b1   : > { %1896 = vmatprep.subr.bf16.mxu1 %v3989_v27  ;;  %v3235_v27 = vld [vmem:[%s5098_s5 + $0x148] sm:$0xff] }
 0x2b4   : > { %1897 = vmatpush1.bf16.msra.mxu1 %v3987_v28  ;;  %v3650_v28 = vpack.c.bf16 %v3235_v27, %v3234_v25  ;;  %v2258_v27 = vld [vmem:[%s5098_s5 + $0x50] sm:$0xff] }
 0x2b5   : > { %1898 = vmatprep.subr.bf16.mxu1 %v3992_v29  ;;  %v3220_v29 = vld [vmem:[%s5098_s5 + $0xd0] sm:$0xff] }
 0x2b8   : > { %1899 = vmatpush1.bf16.msra.mxu1 %v3990_v30  ;;  %v3221_v30 = vld [vmem:[%s5098_s5 + $0xd8] sm:$0xff] }
 0x2b9   : > { %1900 = vmatprep.subr.bf16.mxu1 %v3995_v31  ;;  %v3605_v31 = vpack.c.bf16 %v3221_v30, %v3220_v29  ;;  %v3268_v29 = vld [vmem:[%s5098_s5 + $0x250] sm:$0xff]  ;;  %v3269_v30 = vld [vmem:[%s5098_s5 + $0x258] sm:$0xff] }
 0x2bc   : > { %1901 = vmatpush1.bf16.msra.mxu1 %v3993_v32  ;;  %v3236_v32 = vld [vmem:[%s5098_s5 + $0x150] sm:$0xff] }
 0x2bd   : > { %2033 = vmatprep.subr.bf16.mxu1 %v3998_v33  ;;  %v3237_v33 = vld [vmem:[%s5098_s5 + $0x158] sm:$0xff] }
 0x2be   : > { %v3653_v34 = vpack.c.bf16 %v3237_v33, %v3236_v32  ;;  %v3701_v32 = vpack.c.bf16 %v3269_v30, %v3268_v29  ;;  %v2260_v33 = vld [vmem:[%s5098_s5 + $0x60] sm:$0xff] }
 0x2bf   : > { %1919 = vmatmul.mubr.bf16.vlgmr.msra.gmra.mrb[8].mxu1 %v1788_v37  ;;  %v3238_v37 = vld [vmem:[%s5098_s5 + $0x160] sm:$0xff] }
 0x2c0   : > { %2034 = vmatpush1.bf16.msra.mxu1 %v3996_v36  ;;  %2065 = vmatprep.mubr.bf16.mxu1 %v4084_v2  ;;  %v4005_v2 = vld [vmem:[%s5096_s3 + $0x230] ss:$8 sps:$4 sm:$0xff]   ;;  %v3223_v36 = vld [vmem:[%s5098_s5 + $0xe8] sm:$0xff]  ;;  %v2693_v30 = vld [vmem:[%s5101_s8] sm:$0x1] }
 0x2c1   : > { %2035 = vmatprep.subr.bf16.mxu1 %v4001_v38  ;;  %v3608_v38 = vpack.c.bf16 %v3223_v36, %v3222_v35  ;;  %v3270_v35 = vld [vmem:[%s5098_s5 + $0x260] sm:$0xff]  ;;  %v3271_v36 = vld [vmem:[%s5098_s5 + $0x268] sm:$0xff] }
 0x2c4   : > { %2036 = vmatpush1.bf16.msra.mxu1 %v3999_v40  ;;  %v3239_v40 = vld [vmem:[%s5098_s5 + $0x168] sm:$0xff] }
 0x2c5   : > { %2037 = vmatprep.subr.bf16.mxu1 %v4004_v41  ;;  %v3656_v41 = vpack.c.bf16 %v3239_v40, %v3238_v37  ;;  %v2262_v40 = vld [vmem:[%s5098_s5 + $0x70] sm:$0xff] }
 0x2c8   : > { %2038 = vmatpush1.bf16.msra.mxu1 %v4002_v42  ;;  %v3224_v42 = vld [vmem:[%s5098_s5 + $0xf0] sm:$0xff] }
 0x2c9   : > { %2039 = vmatprep.subr.bf16.mxu1 %v4007_v43  ;;  %v3225_v43 = vld [vmem:[%s5098_s5 + $0xf8] sm:$0xff] }
 0x2cc   : > { %2040 = vmatpush1.bf16.msra.mxu1 %v4005_v2  ;;  %v3240_v2 = vld [vmem:[%s5098_s5 + $0x170] sm:$0xff] }
 0x2cd   : > { %2041 = vmatprep.subr.bf16.mxu1 %v4010_v44  ;;  %v3611_v44 = vpack.c.bf16 %v3225_v43, %v3224_v42  ;;  %v3272_v42 = vld [vmem:[%s5098_s5 + $0x270] sm:$0xff]  ;;  %v3273_v43 = vld [vmem:[%s5098_s5 + $0x278] sm:$0xff] }
 0x2d0   : > { %2042 = vmatpush1.bf16.msra.mxu1 %v4008_v46  ;;  %v3241_v46 = vld [vmem:[%s5098_s5 + $0x178] sm:$0xff] }
 0x2d1   : > { %2043 = vmatprep.subr.bf16.mxu1 %v4013_v47  ;;  %v3659_v47 = vpack.c.bf16 %v3241_v46, %v3240_v2  ;;  %v3242_v46 = vld [vmem:[%s5098_s5 + $0x180] sm:$0xff] }
 0x2d4   : > { %2044 = vmatpush1.bf16.msra.mxu1 %v4011_v48 }
 0x2d5   : > { %2045 = vmatprep.subr.bf16.mxu1 %v4016_v49 }
 0x2d8   : > { %2046 = vmatpush1.bf16.msra.mxu1 %v4014_v16 }
 0x2d9   : > { %2047 = vmatprep.subr.bf16.mxu1 %v4019_v50 }
 0x2dc   : > { %2048 = vmatpush1.bf16.msra.mxu1 %v4017_v45 }
 0x2dd   : > { %3637 = vmatprep.subr.bf16.mxu1 %v4087_v54 }
 0x2df   : > { %2066 = vmatmul.mubr.bf16.vlgmr.msra.gmra.mrb[8].mxu1 %v1935_v53 }
 0x2e0   : > { %3639 = vmatpush3.bf16.msra.mxu1 %v3638_v57  ;;  %3472 = vmatprep.mubr.msk.f32.mxu1 %vm4088_vm0, %v4085_v39  ;;  %v2248_v57 = vld [vmem:[%s5098_s5] sm:$0xff] }
 0x2e1   : > { %3640 = vmatprep.subr.bf16.mxu1 %v4087_v54  ;;  %v3614_v62 = vpack.c.bf16 %v2249_v59, %v2248_v57  ;;  %v3249_v57 = vld [vmem:[%s5098_s5 + $0x1b8] sm:$0xff] }
 0x2e4   : > { %3642 = vmatpush3.bf16.msra.mxu1 %v3641_v61  ;;  %v3259_v61 = vld [vmem:[%s5098_s5 + $0x208] sm:$0xff] }
 0x2e5   : > { %3643 = vmatprep.subr.bf16.mxu1 %v4087_v54  ;;  %v3686_v0 = vpack.c.bf16 %v3259_v61, %v3258_v60  ;;  %v3250_v60 = vld [vmem:[%s5098_s5 + $0x1c0] sm:$0xff]  ;;  %v3251_v61 = vld [vmem:[%s5098_s5 + $0x1c8] sm:$0xff] }
 0x2e8   : > { %3645 = vmatpush3.bf16.msra.mxu1 %v3644_v1  ;;  %v2250_v1 = vld [vmem:[%s5098_s5 + $0x10] sm:$0xff] }
 0x2e9   : > { %3646 = vmatprep.subr.bf16.mxu1 %v4087_v54 }
 0x2ec   : > { %3648 = vmatpush3.bf16.msra.mxu1 %v3647_v22  ;;  %v2257_v22 = vld [vmem:[%s5098_s5 + $0x48] sm:$0xff] }
 0x2ed   : > { %3649 = vmatprep.subr.bf16.mxu1 %v4087_v54  ;;  %v3626_v25 = vpack.c.bf16 %v2257_v22, %v2256_v21 }
 0x2f0   : > { %3651 = vmatpush3.bf16.msra.mxu1 %v3650_v28  ;;  %v2259_v28 = vld [vmem:[%s5098_s5 + $0x58] sm:$0xff] }
 0x2f1   : > { %3652 = vmatprep.subr.bf16.mxu1 %v4087_v54 }
 0x2f4   : > { %3654 = vmatpush3.bf16.msra.mxu1 %v3653_v34  ;;  %v2261_v34 = vld [vmem:[%s5098_s5 + $0x68] sm:$0xff] }
 0x2f5   : > { %3655 = vmatprep.subr.bf16.mxu1 %v4087_v54  ;;  %v3632_v37 = vpack.c.bf16 %v2261_v34, %v2260_v33 }
 0x2f8   : > { %3657 = vmatpush3.bf16.msra.mxu1 %v3656_v41  ;;  %v2263_v41 = vld [vmem:[%s5098_s5 + $0x78] sm:$0xff] }
 0x2f9   : > { %3658 = vmatprep.subr.bf16.mxu1 %v4087_v54  ;;  %v3635_v2 = vpack.c.bf16 %v2263_v41, %v2262_v40 }
 0x2fc   : > { %3660 = vmatpush3.bf16.msra.mxu1 %v3659_v47  ;;  %v3243_v47 = vld [vmem:[%s5098_s5 + $0x188] sm:$0xff] }
 0x2fd   : > { %3685 = vmatprep.subr.bf16.mxu1 %v4087_v54 }
 0x3b2   : > { %v2067_v3 = vpop.f32.mrb[8].mxu1 }
 0x3b3   : > { %v2069_v4 = vpop.f32.mrb[9].mxu1 }
 0x3b4   : > { %v2071_v5 = vpop.f32.mrb[10].mxu1 }
 0x3b5   : > { %v3580_v6 = vpack.c.bf16 %v2071_v5, %v2067_v3  ;;  %v2073_v7 = vpop.f32.mrb[11].mxu1  ;;  %v2251_v3 = vld [vmem:[%s5098_s5 + $0x18] sm:$0xff] }
 0x3b6   : > { %v3577_v8 = vpack.c.bf16 %v2073_v7, %v2069_v4  ;;  %v3260_v4 = vld [vmem:[%s5098_s5 + $0x210] sm:$0xff]  ;;  %v3261_v5 = vld [vmem:[%s5098_s5 + $0x218] sm:$0xff] }
 0x3b7   : > { %v3689_v9 = vpack.c.bf16 %v3261_v5, %v3260_v4  ;;  %v3254_v4 = vld [vmem:[%s5098_s5 + $0x1e0] sm:$0xff]  ;;  %v3255_v5 = vld [vmem:[%s5098_s5 + $0x1e8] sm:$0xff] }
 0x3b8   : > { %3579 = vmatprep.subr.msk.bf16.mxu0 %vm3578_vm14, %v3577_v8 }
 0x3b9   : > { %3582 = vmatpush1.bf16.msk.msra.mxu0 %vm3578_vm14, %v3580_v6 }
 0x3ba   : > { %3585 = vmatprep.subr.msk.bf16.mxu0 %vm3578_vm14, %v3577_v8  ;;  %v3617_v8 = vpack.c.bf16 %v2251_v3, %v2250_v1  ;;  %v3253_v1 = vld [vmem:[%s5098_s5 + $0x1d8] sm:$0xff] }
 0x3bc   : > { %3205 = vmatmul.mubr.msk.f32.vlgmr.msra.gmra.mrb[8].mxu0 %vm2080_vm15, %v4457_v58  ;;  %v3214_v58 = vld [vmem:[%s5098_s5 + $0xa0] sm:$0xff] }
 0x3bd   : > { %3588 = vmatpush1.bf16.msk.msra.mxu0 %vm3578_vm14, %v3580_v6  ;;  %2227 = vmatprep.mubr.f32.mxu0 %v4085_v39  ;;  %v3596_v17 = vpack.c.bf16 %v3215_v15, %v3214_v58  ;;  %v3692_v58 = vpack.c.bf16 %v3263_v13, %v3262_v12  ;;  %v2254_v15 = vld [vmem:[%s5098_s5 + $0x30] sm:$0xff] }
 0x3be   : > { %3589 = vmatprep.subr.bf16.mxu0 %v4087_v54 }
 0x3c0   : > { %3208 = vmatmul.mubr.msk.f32.vlgmr.msra.gmra.mrb[10].mxu0 %vm2080_vm15, %v4473_v63  ;;  %v3216_v63 = vld [vmem:[%s5098_s5 + $0xb0] sm:$0xff] }
 0x3c1   : > { %3591 = vmatpush3.bf16.msra.mxu0 %v3590_v11  ;;  %v3599_v20 = vpack.c.bf16 %v3217_v18, %v3216_v63  ;;  %3402 = vmatprep.mubr.msk.f32.mxu0 %vm4088_vm0, %v4085_v39  ;;  %v2253_v11 = vld [vmem:[%s5098_s5 + $0x28] sm:$0xff]  ;;  %v3264_v63 = vld [vmem:[%s5098_s5 + $0x230] sm:$0xff]  ;;  %v3265_v18 = vld [vmem:[%s5098_s5 + $0x238] sm:$0xff] }
 0x3c2   : > { %3592 = vmatprep.subr.bf16.mxu0 %v4087_v54 }
 0x3c5   : > { %3594 = vmatpush3.bf16.msra.mxu0 %v3593_v14  ;;  %v3620_v14 = vpack.c.bf16 %v2253_v11, %v2252_v10  ;;  %v2692_v11 = vld [vmem:[%s5100_s7] sm:$0xff] }
 0x3c6   : > { %3595 = vmatprep.subr.bf16.mxu0 %v4087_v54 }
 0x3c9   : > { %3597 = vmatpush3.bf16.msra.mxu0 %v3596_v17  ;;  %v2255_v17 = vld [vmem:[%s5098_s5 + $0x38] sm:$0xff] }
 0x3ca   : > { %3598 = vmatprep.subr.bf16.mxu0 %v4087_v54  ;;  %v3623_v19 = vpack.c.bf16 %v2255_v17, %v2254_v15 }
 0x3cd   : > { %3600 = vmatpush3.bf16.msra.mxu0 %v3599_v20  ;;  %v3695_v20 = vpack.c.bf16 %v3265_v18, %v3264_v63 }
 0x3ce   : > { %3601 = vmatprep.subr.bf16.mxu0 %v4087_v54 }
 0x3d1   : > { %3603 = vmatpush3.bf16.msra.mxu0 %v3602_v26  ;;  %v3698_v26 = vpack.c.bf16 %v3267_v24, %v3266_v23  ;;  %v2689_v24 = vld [vmem:[%s5099_s6] sm:$0x1] }
 0x3d2   : > { %3604 = vmatprep.subr.bf16.mxu0 %v4087_v54 }
 0x3d5   : > { %3606 = vmatpush3.bf16.msra.mxu0 %v3605_v31  ;;  %v3629_v31 = vpack.c.bf16 %v2259_v28, %v2258_v27  ;;  %v2769_v27 = vld [vmem:[%s5102_s9] sm:$0xff]  ;;  %v2770_v28 = vld [vmem:[%s5102_s9 + $0x8] sm:$0xff] }
 0x3d6   : > { %3607 = vmatprep.subr.bf16.mxu0 %v4087_v54  ;;  %v3710_v29 = vpack.c.bf16 %v2770_v28, %v2769_v27 }
 0x3d9   : > { %3609 = vmatpush3.bf16.msra.mxu0 %v3608_v38  ;;  %v3704_v38 = vpack.c.bf16 %v3271_v36, %v3270_v35 }
 0x3da   : > { %3610 = vmatprep.subr.bf16.mxu0 %v4087_v54 }
 0x3dd   : > { %3612 = vmatpush3.bf16.msra.mxu0 %v3611_v44  ;;  %v3707_v44 = vpack.c.bf16 %v3273_v43, %v3272_v42 }
 0x3de   : > { %3613 = vmatprep.subr.bf16.mxu0 %v4087_v54 }
 0x48f   : > { %v2156_v48 = vpop.f32.mrb[8].mxu0 }
 0x490   : > { %v2158_v49 = vpop.f32.mrb[9].mxu0 }
 0x493   : > { %v2229_v16 = vpop.f32.mrb[10].mxu0 }
 0x494   : > { %v2234_v50 = vmax.f32 %v2156_v48, %v2229_v16  ;;  %v2231_v45 = vpop.f32.mrb[11].mxu0  ;;  %v3662_v48 = vpack.c.bf16 %v3243_v47, %v3242_v46  ;;  %v3245_v16 = vld [vmem:[%s5098_s5 + $0x198] sm:$0xff] }
 0x495   : > { %v2235_v51 = vmax.f32 %v2158_v49, %v2231_v45  ;;  %v3244_v49 = vld [vmem:[%s5098_s5 + $0x190] sm:$0xff] }
 0x497   : > { %v2236_v53 = vmax.f32 %v2234_v50, %v2235_v51  ;;  %v3665_v51 = vpack.c.bf16 %v3245_v16, %v3244_v49 }
 0x499   : > { %v2244_v55 = vadd.f32 %v3209_v52, %v2236_v53  ;;  %v3246_v52 = vld [vmem:[%s5098_s5 + $0x1a0] sm:$0xff]  ;;  %v3247_v53 = vld [vmem:[%s5098_s5 + $0x1a8] sm:$0xff] }
 0x49b   : > { %v2245_v56 = vmax.f32 %v2244_v55, 0.0  ;;  %v3668_v55 = vpack.c.bf16 %v3247_v53, %v3246_v52 }
 0x49d   : > { %2246 = vst [vmem:[#allocation3] sm:$0x1f] %v2245_v56  ;;  %v3248_v56 = vld [vmem:[%s5098_s5 + $0x1b0] sm:$0xff] }
 0x49e   : > { %v3671_v59 = vpack.c.bf16 %v3249_v57, %v3248_v56 }
 0x4a4   : > { %v2264_v6 = vld [vmem:[#allocation3 + $0x1] sm:$0x1]  ;;  %v2422_v7 = vld [vmem:[#allocation3 + $0x2] sm:$0x1]  ;;  %v2247_v50 = vld [vmem:[#allocation3] sm:$0x1] }
 0x4a5   : > { %3403 = vmatmul.mubr.f32.vlgmr.msra.gmra.mrb[12].mxu0 %v2264_v6  ;;  %3473 = vmatmul.mubr.f32.vlgmr.msra.gmra.mrb[12].mxu1 %v2422_v7  ;;  %v2600_v45 = vld [vmem:[#allocation3 + $0x4] sm:$0x1]  ;;  %v3680_v6 = vpack.c.bf16 %v3255_v5, %v3254_v4  ;;  %v2511_v10 = vld [vmem:[#allocation3 + $0x3] sm:$0x1] }
 0x4a6   : > { %3615 = vmatpush3.bf16.msra.mxu0 %v3614_v62  ;;  %3687 = vmatpush3.bf16.msra.mxu1 %v3686_v0  ;;  %v3674_v62 = vpack.c.bf16 %v3251_v61, %v3250_v60  ;;  %v3252_v0 = vld [vmem:[%s5098_s5 + $0x1d0] sm:$0xff] }
 0x4a7   : > { %3616 = vmatprep.subr.bf16.mxu0 %v4087_v54  ;;  %3688 = vmatprep.subr.bf16.mxu1 %v4087_v54  ;;  %v3677_v3 = vpack.c.bf16 %v3253_v1, %v3252_v0  ;;  %v3256_v7 = vld [vmem:[%s5098_s5 + $0x1f0] sm:$0xff] }
 0x4a8   : > { %3437 = vmatprep.mubr.msk.f32.mxu0 %vm4088_vm0, %v4085_v39  ;;  %3542 = vmatprep.mubr.msk.f32.mxu1 %vm4088_vm0, %v4085_v39 }
 0x4aa   : > { %3618 = vmatpush3.bf16.msra.mxu0 %v3617_v8  ;;  %3690 = vmatpush3.bf16.msra.mxu1 %v3689_v9  ;;  %v3257_v8 = vld [vmem:[%s5098_s5 + $0x1f8] sm:$0xff] }
 0x4ab   : > { %3619 = vmatprep.subr.bf16.mxu0 %v4087_v54  ;;  %3691 = vmatprep.subr.bf16.mxu1 %v4087_v54  ;;  %v3683_v9 = vpack.c.bf16 %v3257_v8, %v3256_v7 }
 0x4ae   : > { %3621 = vmatpush3.bf16.msra.mxu0 %v3620_v14  ;;  %3693 = vmatpush3.bf16.msra.mxu1 %v3692_v58 }
 0x4af   : > { %3622 = vmatprep.subr.bf16.mxu0 %v4087_v54  ;;  %3694 = vmatprep.subr.bf16.mxu1 %v4087_v54 }
 0x4b2   : > { %3624 = vmatpush3.bf16.msra.mxu0 %v3623_v19  ;;  %3696 = vmatpush3.bf16.msra.mxu1 %v3695_v20 }
 0x4b3   : > { %3625 = vmatprep.subr.bf16.mxu0 %v4087_v54  ;;  %3697 = vmatprep.subr.bf16.mxu1 %v4087_v54 }
 0x4b6   : > { %3627 = vmatpush3.bf16.msra.mxu0 %v3626_v25  ;;  %3699 = vmatpush3.bf16.msra.mxu1 %v3698_v26 }
 0x4b7   : > { %3628 = vmatprep.subr.bf16.mxu0 %v4087_v54  ;;  %3700 = vmatprep.subr.bf16.mxu1 %v4087_v54 }
 0x4ba   : > { %3630 = vmatpush3.bf16.msra.mxu0 %v3629_v31  ;;  %3702 = vmatpush3.bf16.msra.mxu1 %v3701_v32 }
 0x4bb   : > { %3631 = vmatprep.subr.bf16.mxu0 %v4087_v54  ;;  %3703 = vmatprep.subr.bf16.mxu1 %v4087_v54 }
 0x4be   : > { %3633 = vmatpush3.bf16.msra.mxu0 %v3632_v37  ;;  %3705 = vmatpush3.bf16.msra.mxu1 %v3704_v38 }
 0x4bf   : > { %3634 = vmatprep.subr.bf16.mxu0 %v4087_v54  ;;  %3706 = vmatprep.subr.bf16.mxu1 %v4087_v54 }
 0x4c2   : > { %3636 = vmatpush3.bf16.msra.mxu0 %v3635_v2  ;;  %3708 = vmatpush3.bf16.msra.mxu1 %v3707_v44 }
 0x4c3   : > { %3661 = vmatprep.subr.bf16.mxu0 %v4087_v54 }
 0x4c5   : > { %3438 = vmatmul.mubr.f32.vlgmr.msra.gmra.mrb[14].mxu0 %v2247_v50  ;;  %3543 = vmatmul.mubr.f32.vlgmr.msra.gmra.mrb[14].mxu1 %v2600_v45 }
 0x4c6   : > { %3663 = vmatpush3.bf16.msra.mxu0 %v3662_v48  ;;  %3507 = vmatprep.mubr.msk.f32.mxu0 %vm4088_vm0, %v4085_v39 }
 0x4c7   : > { %3664 = vmatprep.subr.bf16.mxu0 %v4087_v54 }
 0x4ca   : > { %3666 = vmatpush3.bf16.msra.mxu0 %v3665_v51 }
 0x4cb   : > { %3667 = vmatprep.subr.bf16.mxu0 %v4087_v54 }
 0x4ce   : > { %3669 = vmatpush3.bf16.msra.mxu0 %v3668_v55 }
 0x4cf   : > { %3670 = vmatprep.subr.bf16.mxu0 %v4087_v54 }
 0x4d2   : > { %3672 = vmatpush3.bf16.msra.mxu0 %v3671_v59 }
 0x4d3   : > { %3673 = vmatprep.subr.bf16.mxu0 %v4087_v54 }
 0x4d6   : > { %3675 = vmatpush3.bf16.msra.mxu0 %v3674_v62 }
 0x4d7   : > { %3676 = vmatprep.subr.bf16.mxu0 %v4087_v54 }
 0x4da   : > { %3678 = vmatpush3.bf16.msra.mxu0 %v3677_v3 }
 0x4db   : > { %3679 = vmatprep.subr.bf16.mxu0 %v4087_v54 }
 0x4de   : > { %3681 = vmatpush3.bf16.msra.mxu0 %v3680_v6 }
 0x4df   : > { %3682 = vmatprep.subr.bf16.mxu0 %v4087_v54 }
 0x4e2   : > { %3684 = vmatpush3.bf16.msra.mxu0 %v3683_v9 }
 0x4e3   : > { %3545 = vmatprep.subr.mxu0 %v4085_v39 }
 0x4e5   : > { %3508 = vmatmul.mubr.f32.vlgmr.msra.gmra.mrb[16].mxu0 %v2511_v10 }
 0x4e6   : > { %3547 = vmatprep.mubr.msk.f32.mxu0 %vm4088_vm0, %v4085_v39  ;;  %3546 = vmatpush3.msra.mxu0 %v2692_v11 }
 0x4e7   : > { %3709 = vmatprep.subr.bf16.mxu0 %v4087_v54 }
 0x578   : > { %v2348_v12 = vpop.f32.mrb[12].mxu0  ;;  %v2506_v13 = vpop.f32.mrb[12].mxu1 }
 0x579   : > { %v3404_v14 = vpop.f32.mrb[13].mxu0  ;;  %v3474_v58 = vpop.f32.mrb[13].mxu1 }
 0x598   : > { %v2418_v15 = vpop.f32.mrb[14].mxu0  ;;  %v2684_v17 = vpop.f32.mrb[14].mxu1 }
 0x599   : > { %v2419_v63 = vadd.f32 %v2418_v15, %v2348_v12  ;;  %v3439_v18 = vpop.f32.mrb[15].mxu0  ;;  %v3544_v19 = vpop.f32.mrb[15].mxu1 }
 0x59b   : > { %v2510_v20 = vadd.f32 %v2506_v13, %v2419_v63 }
 0x5b8   : > { %v2595_v21 = vpop.f32.mrb[16].mxu0 }
 0x5b9   : > { %v2599_v22 = vadd.f32 %v2595_v21, %v2510_v20  ;;  %v3509_v23 = vpop.f32.mrb[17].mxu0 }
 0x5bb   : > { %v2688_v25 = vadd.f32 %v2684_v17, %v2599_v22 }
 0x5bd   : > { %v2690_v26 = vadd.f32 %v2689_v24, %v2688_v25 }
 0x5bf   : > { %v2691_v54 = vmax.f32 %v2690_v26, 0.0 }
 0x5c1   : > { %3548 = vmatmul.mubr.msk.f32.vlgmr.msra.gmra.mrb[18].mxu0 %vm2694_vm1, %v2691_v54 }
 0x5c2   : > { %3554 = vmatprep.mubr.msk.f32.mxu0 %vm4088_vm0, %v4085_v39  ;;  %3711 = vmatpush3.bf16.msra.mxu0 %v3710_v29  ;;  %v2771_v39 = vld [vmem:[%s5103_s10] sm:$0x1] }
 0x694   : > { %v2764_v31 = vpop.f32.mrb[18].mxu0 }
 0x695   : > { %v2765_v32 = vadd.f32 %v2764_v31, %v2693_v30  ;;  %v3549_v33 = vpop.f32.mrb[19].mxu0 }
 0x697   : > { %v2768_v34 = vmax.f32 %v2765_v32, 0.0 }
 0x699   : > { %3555 = vmatmul.mubr.msk.f32.vlgmr.msra.gmra.mrb[20].mxu0 %vm2772_vm2, %v2768_v34 }
 0x76c   : > { %v2842_v35 = vpop.f32.mrb[20].mxu0 }
 0x76d   : > { %v2843_v36 = vadd.f32 %v2842_v35, %v2771_v39  ;;  %v3556_v37 = vpop.f32.mrb[21].mxu0 }
 0x76f   : > { %2847 = vst.msk [vmem:[%s378_s22] sm:$0x1] %vm2846_vm3, %v2843_v36 }
 0x770   : > { %4033 = shalt.err (!%p4030_p3)
}
 0x771   : > { %s4034_s13 = scalar_lea.hbm %s5051_s29, 16  ;;  %s4038_s16 = scalar_lea.hbm %s5104_s11, 32 }
 0x772   : > { %p4035_p4 = scmp.ne.s32.totalorder %s5051_s29, %s4034_s13  ;;  %p4039_p9 = scmp.lt.u32.totalorder %s5051_s29, %s5104_s11 }
 0x773   : > { %p4040_p10 = scmp.lt.u32.totalorder %s4038_s16, %s4034_s13  ;;  %p4042_p12 = scmp.lt.u32.totalorder %s4034_s13, %s5051_s29 }
 0x774   : > { %p4036_p7 = pnand %p4035_p4, %p4188_p5 }
 0x775   : > { %p4041_p11 = por %p4040_p10, %p4039_p9 }
 0x776   : > { %p4037_p8 = pneg %p4036_p7 }
 0x777   : > { %p4043_p13 = por %p4042_p12, %p4041_p11 }
 0x779   : > { %p4044_p0 = pnand %p4043_p13, %p4037_p8 }
 0x77b   : > { %4047 = shalt.err (!%p4044_p0)
}
 0x77c   : > { %3760 = dma.vmem_to_hbm [thread:$0]  (%p4188_p5), %s5053_s24, 16, %s5051_s29, %s2849_s30  }
 0x77d PF: > { %p3766_p1 = scmp.ge.s32.totalorder %s4082_s20, 2  ;;  %s2873_s12 = sand.u32 1, %s4070_s17  }
 0x77e   : > { %s2874_s14 = scalar_lea.sflag [#allocation5], %s2873_s12 }
 0x77f   : > { %p3763_p2 = pnand %p3766_p1, %p4192_p6 }
 0x781   : > { %4065 = dma.done.wait (!%p3763_p2), %s2874_s14, 16  }
 0x782   : > { %4067 = vsyncadd (!%p3763_p2), %s2874_s14, 4294967280  ;;  %s5110_s15 = sld [smem:[#allocation7_spill]]  ;;  %p21_p3 = scmp.ge.s32.totalorder %s4175_s23, 4  }
 0x783   : > { %s5111_s17 = smov %s4074_s18  ;;  %s5112_s18 = smov %s4078_s19 }
 0x784   : > { %s5114_s20 = smov %s4175_s23  ;;  %23 = sbr.rel (!%p21_p3) target bundleno = 3 (0x3), region = 111 }
 0x788   : > { %s5113_s19 = smov %s5110_s15 }
 0x78b   :  { %2878 = vsyncpa [#allocation5], 1 }
 0x78c   :  { %2880 = vsyncpa [#allocation5 + $0x1], 1 }

</bundles_post_ra>
